<compile_context>
chip_gen: v7x
topology: tpu7x:2x2x1
jax: 0.10.0
libtpu: 0.0.40
codegen_flags: <defaults>
</compile_context>

<pallas_src>
import math
import functools

import numpy as np
import jax
import jax.numpy as jnp
from jax.experimental import pallas as pl
from jax.experimental.pallas import tpu as pltpu


# ----------------------------- fused forward kernel -----------------------------

def make_fused_kernel(meta):
    """meta: dict(blocks=[...], n_mid, batch, emb, num_fields, total_fields)."""
    blocks = meta["blocks"]
    n_mid = meta["n_mid"]
    B = meta["batch"]
    E = meta["emb"]
    F = meta["num_fields"]
    Ftot = meta["total_fields"]

    def kernel(*refs):
        it = iter(refs)
        feat_ref = next(it)                       # (B, F*E)   f32  NCHW-flat (cin=1)
        tgt_ref = next(it)                        # (B, 1)     f32
        blk_refs = [dict(conv=next(it),           # (cin*H*E, C*H*E)     bf16
                         bias=next(it),           # (1, C)               f32
                         gamma=next(it),          # (1, C)               f32
                         beta=next(it),           # (1, C)               f32
                         wrec=next(it),           # (C*Ho*E, rc*Ho*E)    bf16
                         brec=next(it))           # (1, rc*Ho*E)         f32
                    for _ in blocks]
        w0a_ref = next(it)                        # (Ftot*E, m0)         bf16
        w0z_ref = next(it)                        # (npairs, m0)         bf16
        b0_ref = next(it)                         # (1, m0)              f32
        mids = [(next(it), next(it)) for _ in range(n_mid)]
        wl_ref = next(it)                         # (1, prev)            f32
        bl_ref = next(it)                         # (1, 1)               f32
        loss_ref = next(it)                       # (1, 1)   out
        ypred_ref = next(it)                      # (B, 1)   out
        comb_ref = next(it)                       # (B, Ftot*E)          f32 scratch
        t3_ref = next(it)                         # (B, Ftot, E)         f32 scratch
        g3_ref = next(it)                         # (B, Ftot, Ftot)      f32 scratch
        pool_refs = [next(it) for _ in blocks]    # (B, C*Ho*E)          f32 scratch

        cur = feat_ref[...]                       # block-0 conv input (cin=1)
        comb_ref[:, 0:F * E] = cur                # combined[:, :F] = original fields

        for blk, d, pool_ref in zip(blocks, blk_refs, pool_refs):
            C, H, Ho = blk["cout"], blk["h_in"], blk["h_out"]
            ps, pad = blk["ps"], blk["pad"]
            HE = H * E
            inv_count = 1.0 / float(B * H * E)

            # Conv2d((kh,1), pad=((kh-1)//2,0)) as ONE bf16 MXU matmul against a banded matrix.
            y = jnp.dot(cur.astype(jnp.bfloat16), d["conv"][...],
                        preferred_element_type=jnp.float32)          # (B, C*H*E)

            # Per-channel: bias + BatchNorm2d(training, batch stats) + Tanh + MaxPool2d((ps,1)).
            # Stats are plain reductions (no structural matmuls); variance clamped at 0.
            for c in range(C):
                lo = c * HE
                yc = y[:, lo:lo + HE] + d["bias"][:, c:c + 1]        # (B, H*E)
                s1 = jnp.sum(jnp.sum(yc, axis=1, keepdims=True), axis=0, keepdims=True)
                s2 = jnp.sum(jnp.sum(yc * yc, axis=1, keepdims=True), axis=0, keepdims=True)
                mu = s1 * inv_count                                  # (1, 1)
                var = jnp.maximum(s2 * inv_count - mu * mu, 0.0)
                scale = jax.lax.rsqrt(var + 1e-5) * d["gamma"][:, c:c + 1]
                shift = d["beta"][:, c:c + 1] - mu * scale
                yct = jnp.tanh(yc * scale + shift)                   # (B, H*E)

                # MaxPool over height: static slices + elementwise max (OOB taps skipped).
                for o in range(Ho):
                    win = None
                    for k in range(ps):
                        h = o * ps + k - pad
                        if 0 <= h < H:
                            seg = yct[:, h * E:(h + 1) * E]          # (B, E)
                            win = seg if win is None else jnp.maximum(win, seg)
                    base = (c * Ho + o) * E
                    pool_ref[:, base:base + E] = win

            pooled = pool_ref[...]                                   # (B, C*Ho*E), torch-flatten order

            # Recombine Linear + Tanh (bf16 MXU matmul), place result into combined via slice store.
            rec = jnp.tanh(jnp.dot(pooled.astype(jnp.bfloat16), d["wrec"][...],
                                   preferred_element_type=jnp.float32) + d["brec"][...])
            comb_ref[:, blk["col0"]:blk["col1"]] = rec
            cur = pooled                                             # next block's NCHW-flat input

        combined = comb_ref[...]                                     # (B, Ftot*E)
        combined_bf = combined.astype(jnp.bfloat16)

        # InnerProductLayer('inner_product') via the Gram matrix G = T @ T^T (bf16 MXU einsum).
        for f in range(Ftot):
            t3_ref[:, f, :] = combined[:, f * E:(f + 1) * E]
        Tb = t3_ref[...].astype(jnp.bfloat16)                        # (B, Ftot, E)
        g3_ref[...] = jnp.einsum("bfe,bge->bfg", Tb, Tb,
                                 preferred_element_type=jnp.float32)  # (B, Ftot, Ftot)

        # MLP layer 0 consumes [combined | triu(G)] via split weights.  The upper-triangle of G
        # (row-major (i,j), j>i, matching torch.masked_select) is consumed row by row against
        # the contiguous row-block of the pair weight, so no (B, npairs) tensor is materialized.
        x = jnp.dot(combined_bf, w0a_ref[...],
                    preferred_element_type=jnp.float32) + b0_ref[...]
        p0 = 0
        for i in range(Ftot - 1):
            ni = Ftot - 1 - i
            gi = g3_ref[:, i, i + 1:]                                # (B, ni)
            x = x + jnp.dot(gi.astype(jnp.bfloat16), w0z_ref[p0:p0 + ni, :],
                            preferred_element_type=jnp.float32)
            p0 += ni
        x = jnp.maximum(x, 0.0)                                      # ReLU after layer 0

        for w_ref, b_ref in mids:                                    # hidden layers + ReLU
            x = jnp.dot(x.astype(jnp.bfloat16), w_ref[...],
                        preferred_element_type=jnp.float32) + b_ref[...]
            x = jnp.maximum(x, 0.0)

        # Final width-1 Linear as a VPU multiply + lane reduce (no N=1 MXU matmul).
        z = jnp.sum(x * wl_ref[...], axis=1, keepdims=True) + bl_ref[...]   # (B, 1)
        # Sigmoid: exp on EUP + approx reciprocal on EUP; clamp to [0,1] so BCE logs are safe.
        p = pl.reciprocal(1.0 + jnp.exp(-z), approx=True)
        p = jnp.minimum(jnp.maximum(p, 0.0), 1.0)
        ypred_ref[...] = p

        # BCELoss(reduction='mean') on probabilities, log clamped at -100 (PyTorch semantics).
        t = tgt_ref[...]
        logp = jnp.maximum(jnp.log(p), -100.0)
        log1mp = jnp.maximum(jnp.log(1.0 - p), -100.0)
        loss_ref[...] = jnp.sum(-(t * logp + (1.0 - t) * log1mp),
                                axis=0, keepdims=True) * (1.0 / float(B))

    return kernel


# ----------------------------- constant-matrix builder (glue JAX / numpy) -----------------------------

def _build_conv_matrix_t(conv_w, cin, cout, kh, h_in, emb):
    """(cin*H*E, cout*H*E) banded matrix A s.t. NCHW-flat @ A == Conv2d((kh,1), pad=((kh-1)//2,0))."""
    pad = (kh - 1) // 2
    hh = np.arange(h_in)
    A = jnp.zeros((cin, h_in, cout, h_in), jnp.float32)
    for k in range(kh):
        shift = jnp.asarray((hh[:, None] == hh[None, :] + (k - pad)).astype(np.float32))
        wk = jnp.transpose(conv_w[:, :, k])                           # (cin, cout)
        A = A + wk[:, None, :, None] * shift[None, :, None, :]
    eye_e = jnp.eye(emb, dtype=jnp.float32)
    A6 = A[:, :, None, :, :, None] * eye_e[None, None, :, None, None, :]   # (ci,h',e',co,h,e)
    return A6.reshape(cin * h_in * emb, cout * h_in * emb)


# ----------------------------- model construction -----------------------------

def build_fgcnn_config(num_fields, emb_size, channels, kernel_heights,
                       pooling_sizes, recombined_channels):
    chans = [1] + list(channels)
    blocks = []
    h = num_fields
    for i in range(1, len(chans)):
        cin, cout = chans[i - 1], chans[i]
        kh = kernel_heights[i - 1]
        ps = pooling_sizes[i - 1]
        rc = recombined_channels[i - 1]
        assert kh % 2 == 1, "kernel_height must be odd for 'same' conv height"
        pool_pad = h % ps
        h_out_pt = (h + 2 * pool_pad - ps) // ps + 1          # PyTorch MaxPool2d output height
        h_next = int(math.ceil(h / ps))                       # FGCNN bookkeeping
        assert h_out_pt == h_next, "config must keep MaxPool output consistent"
        assert 2 * pool_pad <= ps, "PyTorch MaxPool2d requires padding <= kernel_size/2"
        blocks.append(dict(cin=cin, cout=cout, kh=kh, ps=ps, rc=rc,
                           h_in=h, h_out=h_next, pool_pad=pool_pad,
                           rec_in=h_next * emb_size * cout,
                           rec_out=h_next * emb_size * rc))
        h = h_next
    return blocks


def init_params(key, blocks, num_fields, emb_size, ln_deep, vocab):
    params = {}
    key, k = jax.random.split(key)
    params["emb_tables"] = 0.1 * jax.random.normal(
        k, (num_fields, vocab, emb_size), jnp.float32)

    blk_params = []
    for blk in blocks:
        key, k1, k2, k3, k4 = jax.random.split(key, 5)
        cw = 0.1 * jax.random.normal(k1, (blk["cout"], blk["cin"], blk["kh"]), jnp.float32)
        cb = 0.1 * jax.random.normal(k2, (blk["cout"],), jnp.float32)
        gamma = jnp.ones((blk["cout"],), jnp.float32)         # BatchNorm2d default init
        beta = jnp.zeros((blk["cout"],), jnp.float32)
        scale = 1.0 / math.sqrt(blk["rec_in"])
        rw_t = scale * jax.random.normal(k3, (blk["rec_in"], blk["rec_out"]), jnp.float32)
        rb = scale * jax.random.normal(k4, (1, blk["rec_out"]), jnp.float32)
        blk_params.append(dict(conv_w=cw, conv_b=cb, bn_gamma=gamma, bn_beta=beta,
                               rec_w_t=rw_t, rec_b=rb))
    params["fgcnn_blocks"] = blk_params

    total_features = num_fields + sum(b["h_out"] * b["rc"] for b in blocks)
    npairs = total_features * (total_features - 1) // 2
    input_dim = npairs + total_features * emb_size

    mlp = []
    ln = [input_dim] + list(ln_deep)
    for i in range(len(ln) - 1):
        n, m = int(ln[i]), int(ln[i + 1])
        key, k1, k2 = jax.random.split(key, 3)
        w = math.sqrt(2.0 / (m + n)) * jax.random.normal(k1, (m, n), jnp.float32)
        bvec = math.sqrt(1.0 / m) * jax.random.normal(k2, (m,), jnp.float32)
        mlp.append(dict(w_t=w.T, b=bvec[None, :]))            # ReLU between layers, Sigmoid at end
    params["mlp"] = mlp

    config = dict(blocks=blocks, total_features=total_features,
                  input_dim=input_dim, npairs=npairs)
    return params, config


# ----------------------------- forward (glue + one pallas_call) -----------------------------

def dist_train_forward(params, config, lS_i, target):
    # --- embedding lookup (glue; stands in for bp.get_emb) ---
    tables = params["emb_tables"]                             # (F, vocab, E)
    F = tables.shape[0]
    emb_list = tables[jnp.arange(F)[:, None], lS_i]           # (F, B, E)
    feature_emb = jnp.swapaxes(emb_list, 0, 1)                # (B, F, E)
    B, _, E = feature_emb.shape
    feat_flat = feature_emb.reshape(B, F * E)                 # NCHW-flat (cin=1)

    blocks = config["blocks"]
    Ftot = config["total_features"]

    inputs = [feat_flat, target]
    meta_blocks = []
    offset = F
    flops = 0
    trans = 0
    for blk, bp_ in zip(blocks, params["fgcnn_blocks"]):
        A = _build_conv_matrix_t(bp_["conv_w"], blk["cin"], blk["cout"],
                                 blk["kh"], blk["h_in"], E).astype(jnp.bfloat16)
        inputs += [A,
                   bp_["conv_b"][None, :],
                   bp_["bn_gamma"][None, :],
                   bp_["bn_beta"][None, :],
                   bp_["rec_w_t"].astype(jnp.bfloat16),
                   bp_["rec_b"]]
        n_new = blk["rc"] * blk["h_out"]
        meta_blocks.append(dict(cout=blk["cout"], h_in=blk["h_in"], h_out=blk["h_out"],
                                ps=blk["ps"], pad=blk["pool_pad"],
                                col0=offset * E, col1=(offset + n_new) * E,
                                pool_w=blk["cout"] * blk["h_out"] * E))
        offset += n_new
        che_in = blk["cin"] * blk["h_in"] * E
        che_out = blk["cout"] * blk["h_in"] * E
        flops += 2 * B * che_in * che_out + 2 * B * blk["rec_in"] * blk["rec_out"]
        trans += B * che_out + B * blk["rec_out"]
    assert offset == Ftot

    mlp = params["mlp"]
    assert len(mlp) >= 2, "final MLP layer must be separate from layer 0"
    split = Ftot * E
    w0 = mlp[0]["w_t"]                                        # (input_dim, m0)
    m0 = int(w0.shape[1])
    npairs = Ftot * (Ftot - 1) // 2
    inputs += [w0[:split].astype(jnp.bfloat16), w0[split:].astype(jnp.bfloat16), mlp[0]["b"]]
    flops += 2 * B * Ftot * Ftot * E                          # Gram
    flops += 2 * B * (split * m0 + npairs * m0)               # MLP layer 0
    for layer in mlp[1:-1]:
        inputs += [layer["w_t"].astype(jnp.bfloat16), layer["b"]]
        flops += 2 * B * int(layer["w_t"].shape[0]) * int(layer["w_t"].shape[1])
    w_last = mlp[-1]["w_t"]                                   # (prev, 1)
    assert int(w_last.shape[1]) == 1
    inputs += [jnp.transpose(w_last), mlp[-1]["b"]]           # (1, prev), (1, 1)
    flops += 2 * B * int(w_last.shape[0])
    trans += 4 * B                                            # sigmoid exp/recip + 2 logs

    meta = dict(blocks=meta_blocks, n_mid=len(mlp) - 2, batch=int(B), emb=int(E),
                num_fields=int(F), total_fields=int(Ftot))
    kernel = make_fused_kernel(meta)

    scratch_shapes = [pltpu.VMEM((B, Ftot * E), jnp.float32),      # combined (2-D, lane-dense)
                      pltpu.VMEM((B, Ftot, E), jnp.float32),       # combined as (B, fields, E)
                      pltpu.VMEM((B, Ftot, Ftot), jnp.float32)]    # Gram matrix
    scratch_shapes += [pltpu.VMEM((B, mb["pool_w"]), jnp.float32) for mb in meta_blocks]

    in_bytes = sum(int(np.prod(a.shape)) * a.dtype.itemsize for a in inputs)
    out_bytes = 4 * (1 + B)
    scratch_bytes = 4 * (2 * B * Ftot * E + B * Ftot * Ftot
                         + sum(B * mb["pool_w"] for mb in meta_blocks))
    vmem_limit = int(min(max(2 * (in_bytes + out_bytes + scratch_bytes) + (4 << 20), 16 << 20),
                         64 << 20))
    cost = pl.CostEstimate(flops=int(flops), transcendentals=int(trans),
                           bytes_accessed=int(in_bytes + out_bytes))

    vmem = functools.partial(pl.BlockSpec, memory_space=pltpu.MemorySpace.VMEM)
    loss2d, y_pred = pl.pallas_call(
        kernel,
        out_shape=(jax.ShapeDtypeStruct((1, 1), jnp.float32),
                   jax.ShapeDtypeStruct((B, 1), jnp.float32)),
        in_specs=[vmem() for _ in inputs],
        out_specs=(vmem(), vmem()),
        scratch_shapes=scratch_shapes,
        compiler_params=pltpu.CompilerParams(vmem_limit_bytes=vmem_limit),
        cost_estimate=cost,
    )(*inputs)
    return loss2d[0, 0], y_pred


# ----------------------------- main -----------------------------

if __name__ == "__main__":
    B = 4
    num_fields = 8
    emb_size = 4
    vocab = 10
    channels = [2, 2]
    kernel_heights = [3, 3]
    pooling_sizes = [2, 2]
    recombined_channels = [1, 1]
    ln_deep = [32, 16, 1]

    blocks = build_fgcnn_config(num_fields, emb_size, channels, kernel_heights,
                                pooling_sizes, recombined_channels)

    key = jax.random.PRNGKey(0)
    key, k_params, k_idx, k_tgt = jax.random.split(key, 4)
    params, config = init_params(k_params, blocks, num_fields, emb_size, ln_deep, vocab)

    lS_i = jax.random.randint(k_idx, (num_fields, B), 0, vocab)     # sparse indices per field
    target = jax.random.uniform(k_tgt, (B, 1), jnp.float32)

    loss, y_pred = dist_train_forward(params, config, lS_i, target)
    jax.block_until_ready((loss, y_pred))
    print("KERNEL_OK")
</pallas_src>

<mosaic_0001>
module attributes {stable_mosaic.version = 11 : i64} {
  func.func @kernel(%arg0: memref<4x32xf32, #tpu.memory_space<vmem>>, %arg1: memref<4x1xf32, #tpu.memory_space<vmem>>, %arg2: memref<32x64xbf16, #tpu.memory_space<vmem>>, %arg3: memref<1x2xf32, #tpu.memory_space<vmem>>, %arg4: memref<1x2xf32, #tpu.memory_space<vmem>>, %arg5: memref<1x2xf32, #tpu.memory_space<vmem>>, %arg6: memref<32x16xbf16, #tpu.memory_space<vmem>>, %arg7: memref<1x16xf32, #tpu.memory_space<vmem>>, %arg8: memref<32x32xbf16, #tpu.memory_space<vmem>>, %arg9: memref<1x2xf32, #tpu.memory_space<vmem>>, %arg10: memref<1x2xf32, #tpu.memory_space<vmem>>, %arg11: memref<1x2xf32, #tpu.memory_space<vmem>>, %arg12: memref<16x8xbf16, #tpu.memory_space<vmem>>, %arg13: memref<1x8xf32, #tpu.memory_space<vmem>>, %arg14: memref<56x32xbf16, #tpu.memory_space<vmem>>, %arg15: memref<91x32xbf16, #tpu.memory_space<vmem>>, %arg16: memref<1x32xf32, #tpu.memory_space<vmem>>, %arg17: memref<32x16xbf16, #tpu.memory_space<vmem>>, %arg18: memref<1x16xf32, #tpu.memory_space<vmem>>, %arg19: memref<1x16xf32, #tpu.memory_space<vmem>>, %arg20: memref<1x1xf32, #tpu.memory_space<vmem>>, %arg21: memref<1x1xf32, #tpu.memory_space<vmem>>, %arg22: memref<4x1xf32, #tpu.memory_space<vmem>>, %arg23: memref<4x56xf32, #tpu.memory_space<vmem>>, %arg24: memref<4x14x4xf32, #tpu.memory_space<vmem>>, %arg25: memref<4x14x14xf32, #tpu.memory_space<vmem>>, %arg26: memref<4x32xf32, #tpu.memory_space<vmem>>, %arg27: memref<4x16xf32, #tpu.memory_space<vmem>>) attributes {dimension_semantics = [], scalar_prefetch = 0 : i64, scratch_operands = 5 : i64, tpu.core_type = #tpu.core_type<tc>} {
    %c0 = arith.constant 0 : index
    %c0_0 = arith.constant 0 : index
    %0 = vector.load %arg0[%c0, %c0_0] : memref<4x32xf32, #tpu.memory_space<vmem>>, vector<4x32xf32>
    %c0_1 = arith.constant 0 : index
    %c0_2 = arith.constant 0 : index
    %1 = vector.load %arg23[%c0_1, %c0_2] : memref<4x56xf32, #tpu.memory_space<vmem>>, vector<4x32xf32>
    tpu.vector_store %arg23[%c0_1, %c0_2], %0 {strides = array<i32>} : memref<4x56xf32, #tpu.memory_space<vmem>>, vector<4x32xf32>,
    %2 = arith.truncf %0 : vector<4x32xf32> to vector<4x32xbf16>
    %c0_3 = arith.constant 0 : index
    %c0_4 = arith.constant 0 : index
    %3 = vector.load %arg2[%c0_3, %c0_4] : memref<32x64xbf16, #tpu.memory_space<vmem>>, vector<32x64xbf16>
    %cst = arith.constant dense<0.000000e+00> : vector<4x64xf32>
    %4 = tpu.matmul %2, %3, %cst {dimension_numbers = #tpu.dot_dimension_numbers<[1], [0], [0], [1], [0, 0, 1, 1], [], []>} : vector<4x32xbf16>, vector<32x64xbf16>, vector<4x64xf32> -> vector<4x64xf32>
    %5 = vector.extract_strided_slice %4 {offsets = [0, 0], sizes = [4, 32], strides = [1, 1]} : vector<4x64xf32> to vector<4x32xf32>
    %c0_5 = arith.constant 0 : index
    %c0_6 = arith.constant 0 : index
    %6 = vector.load %arg3[%c0_5, %c0_6] : memref<1x2xf32, #tpu.memory_space<vmem>>, vector<1x1xf32>
    %7 = vector.broadcast %6 : vector<1x1xf32> to vector<4x32xf32>
    %8 = arith.addf %5, %7 : vector<4x32xf32>
    %cst_7 = arith.constant dense<0.000000e+00> : vector<4xf32>
    %9 = vector.multi_reduction <add>, %8, %cst_7 [1] : vector<4x32xf32> to vector<4xf32>
    %10 = vector.shape_cast %9 : vector<4xf32> to vector<4x1xf32>
    %cst_8 = arith.constant dense<0.000000e+00> : vector<1xf32>
    %11 = vector.multi_reduction <add>, %10, %cst_8 [0] : vector<4x1xf32> to vector<1xf32>
    %12 = vector.shape_cast %11 : vector<1xf32> to vector<1x1xf32>
    %13 = arith.mulf %8, %8 : vector<4x32xf32>
    %cst_9 = arith.constant dense<0.000000e+00> : vector<4xf32>
    %14 = vector.multi_reduction <add>, %13, %cst_9 [1] : vector<4x32xf32> to vector<4xf32>
    %15 = vector.shape_cast %14 : vector<4xf32> to vector<4x1xf32>
    %cst_10 = arith.constant dense<0.000000e+00> : vector<1xf32>
    %16 = vector.multi_reduction <add>, %15, %cst_10 [0] : vector<4x1xf32> to vector<1xf32>
    %17 = vector.shape_cast %16 : vector<1xf32> to vector<1x1xf32>
    %cst_11 = arith.constant 7.812500e-03 : f32
    %18 = vector.broadcast %cst_11 : f32 to vector<1x1xf32>
    %19 = arith.mulf %12, %18 : vector<1x1xf32>
    %cst_12 = arith.constant 7.812500e-03 : f32
    %20 = vector.broadcast %cst_12 : f32 to vector<1x1xf32>
    %21 = arith.mulf %17, %20 : vector<1x1xf32>
    %22 = arith.mulf %19, %19 : vector<1x1xf32>
    %23 = arith.subf %21, %22 : vector<1x1xf32>
    %cst_13 = arith.constant 0.000000e+00 : f32
    %24 = vector.broadcast %cst_13 : f32 to vector<1x1xf32>
    %25 = arith.maximumf %23, %24 : vector<1x1xf32>
    %cst_14 = arith.constant 9.99999974E-6 : f32
    %26 = vector.broadcast %cst_14 : f32 to vector<1x1xf32>
    %27 = arith.addf %25, %26 : vector<1x1xf32>
    %28 = math.rsqrt %27 : vector<1x1xf32>
    %c0_15 = arith.constant 0 : index
    %c0_16 = arith.constant 0 : index
    %29 = vector.load %arg4[%c0_15, %c0_16] : memref<1x2xf32, #tpu.memory_space<vmem>>, vector<1x1xf32>
    %30 = arith.mulf %28, %29 : vector<1x1xf32>
    %c0_17 = arith.constant 0 : index
    %c0_18 = arith.constant 0 : index
    %31 = vector.load %arg5[%c0_17, %c0_18] : memref<1x2xf32, #tpu.memory_space<vmem>>, vector<1x1xf32>
    %32 = arith.mulf %19, %30 : vector<1x1xf32>
    %33 = arith.subf %31, %32 : vector<1x1xf32>
    %34 = vector.broadcast %30 : vector<1x1xf32> to vector<4x32xf32>
    %35 = arith.mulf %8, %34 : vector<4x32xf32>
    %36 = vector.broadcast %33 : vector<1x1xf32> to vector<4x32xf32>
    %37 = arith.addf %35, %36 : vector<4x32xf32>
    %38 = math.tanh %37 : vector<4x32xf32>
    %39 = vector.extract_strided_slice %38 {offsets = [0, 0], sizes = [4, 4], strides = [1, 1]} : vector<4x32xf32> to vector<4x4xf32>
    %40 = vector.extract_strided_slice %38 {offsets = [0, 4], sizes = [4, 4], strides = [1, 1]} : vector<4x32xf32> to vector<4x4xf32>
    %41 = arith.maximumf %39, %40 : vector<4x4xf32>
    %c0_19 = arith.constant 0 : index
    %c0_20 = arith.constant 0 : index
    %42 = vector.load %arg26[%c0_19, %c0_20] : memref<4x32xf32, #tpu.memory_space<vmem>>, vector<4x4xf32>
    tpu.vector_store %arg26[%c0_19, %c0_20], %41 {strides = array<i32>} : memref<4x32xf32, #tpu.memory_space<vmem>>, vector<4x4xf32>,
    %43 = vector.extract_strided_slice %38 {offsets = [0, 8], sizes = [4, 4], strides = [1, 1]} : vector<4x32xf32> to vector<4x4xf32>
    %44 = vector.extract_strided_slice %38 {offsets = [0, 12], sizes = [4, 4], strides = [1, 1]} : vector<4x32xf32> to vector<4x4xf32>
    %45 = arith.maximumf %43, %44 : vector<4x4xf32>
    %c0_21 = arith.constant 0 : index
    %c4 = arith.constant 4 : index
    %46 = vector.load %arg26[%c0_21, %c4] : memref<4x32xf32, #tpu.memory_space<vmem>>, vector<4x4xf32>
    tpu.vector_store %arg26[%c0_21, %c4], %45 {strides = array<i32>} : memref<4x32xf32, #tpu.memory_space<vmem>>, vector<4x4xf32>,
    %47 = vector.extract_strided_slice %38 {offsets = [0, 16], sizes = [4, 4], strides = [1, 1]} : vector<4x32xf32> to vector<4x4xf32>
    %48 = vector.extract_strided_slice %38 {offsets = [0, 20], sizes = [4, 4], strides = [1, 1]} : vector<4x32xf32> to vector<4x4xf32>
    %49 = arith.maximumf %47, %48 : vector<4x4xf32>
    %c0_22 = arith.constant 0 : index
    %c8 = arith.constant 8 : index
    %50 = vector.load %arg26[%c0_22, %c8] : memref<4x32xf32, #tpu.memory_space<vmem>>, vector<4x4xf32>
    tpu.vector_store %arg26[%c0_22, %c8], %49 {strides = array<i32>} : memref<4x32xf32, #tpu.memory_space<vmem>>, vector<4x4xf32>,
    %51 = vector.extract_strided_slice %38 {offsets = [0, 24], sizes = [4, 4], strides = [1, 1]} : vector<4x32xf32> to vector<4x4xf32>
    %52 = vector.extract_strided_slice %38 {offsets = [0, 28], sizes = [4, 4], strides = [1, 1]} : vector<4x32xf32> to vector<4x4xf32>
    %53 = arith.maximumf %51, %52 : vector<4x4xf32>
    %c0_23 = arith.constant 0 : index
    %c12 = arith.constant 12 : index
    %54 = vector.load %arg26[%c0_23, %c12] : memref<4x32xf32, #tpu.memory_space<vmem>>, vector<4x4xf32>
    tpu.vector_store %arg26[%c0_23, %c12], %53 {strides = array<i32>} : memref<4x32xf32, #tpu.memory_space<vmem>>, vector<4x4xf32>,
    %55 = vector.extract_strided_slice %4 {offsets = [0, 32], sizes = [4, 32], strides = [1, 1]} : vector<4x64xf32> to vector<4x32xf32>
    %c0_24 = arith.constant 0 : index
    %c1 = arith.constant 1 : index
    %56 = vector.load %arg3[%c0_24, %c1] : memref<1x2xf32, #tpu.memory_space<vmem>>, vector<1x1xf32>
    %57 = vector.broadcast %56 : vector<1x1xf32> to vector<4x32xf32>
    %58 = arith.addf %55, %57 : vector<4x32xf32>
    %cst_25 = arith.constant dense<0.000000e+00> : vector<4xf32>
    %59 = vector.multi_reduction <add>, %58, %cst_25 [1] : vector<4x32xf32> to vector<4xf32>
    %60 = vector.shape_cast %59 : vector<4xf32> to vector<4x1xf32>
    %cst_26 = arith.constant dense<0.000000e+00> : vector<1xf32>
    %61 = vector.multi_reduction <add>, %60, %cst_26 [0] : vector<4x1xf32> to vector<1xf32>
    %62 = vector.shape_cast %61 : vector<1xf32> to vector<1x1xf32>
    %63 = arith.mulf %58, %58 : vector<4x32xf32>
    %cst_27 = arith.constant dense<0.000000e+00> : vector<4xf32>
    %64 = vector.multi_reduction <add>, %63, %cst_27 [1] : vector<4x32xf32> to vector<4xf32>
    %65 = vector.shape_cast %64 : vector<4xf32> to vector<4x1xf32>
    %cst_28 = arith.constant dense<0.000000e+00> : vector<1xf32>
    %66 = vector.multi_reduction <add>, %65, %cst_28 [0] : vector<4x1xf32> to vector<1xf32>
    %67 = vector.shape_cast %66 : vector<1xf32> to vector<1x1xf32>
    %cst_29 = arith.constant 7.812500e-03 : f32
    %68 = vector.broadcast %cst_29 : f32 to vector<1x1xf32>
    %69 = arith.mulf %62, %68 : vector<1x1xf32>
    %cst_30 = arith.constant 7.812500e-03 : f32
    %70 = vector.broadcast %cst_30 : f32 to vector<1x1xf32>
    %71 = arith.mulf %67, %70 : vector<1x1xf32>
    %72 = arith.mulf %69, %69 : vector<1x1xf32>
    %73 = arith.subf %71, %72 : vector<1x1xf32>
    %cst_31 = arith.constant 0.000000e+00 : f32
    %74 = vector.broadcast %cst_31 : f32 to vector<1x1xf32>
    %75 = arith.maximumf %73, %74 : vector<1x1xf32>
    %cst_32 = arith.constant 9.99999974E-6 : f32
    %76 = vector.broadcast %cst_32 : f32 to vector<1x1xf32>
    %77 = arith.addf %75, %76 : vector<1x1xf32>
    %78 = math.rsqrt %77 : vector<1x1xf32>
    %c0_33 = arith.constant 0 : index
    %c1_34 = arith.constant 1 : index
    %79 = vector.load %arg4[%c0_33, %c1_34] : memref<1x2xf32, #tpu.memory_space<vmem>>, vector<1x1xf32>
    %80 = arith.mulf %78, %79 : vector<1x1xf32>
    %c0_35 = arith.constant 0 : index
    %c1_36 = arith.constant 1 : index
    %81 = vector.load %arg5[%c0_35, %c1_36] : memref<1x2xf32, #tpu.memory_space<vmem>>, vector<1x1xf32>
    %82 = arith.mulf %69, %80 : vector<1x1xf32>
    %83 = arith.subf %81, %82 : vector<1x1xf32>
    %84 = vector.broadcast %80 : vector<1x1xf32> to vector<4x32xf32>
    %85 = arith.mulf %58, %84 : vector<4x32xf32>
    %86 = vector.broadcast %83 : vector<1x1xf32> to vector<4x32xf32>
    %87 = arith.addf %85, %86 : vector<4x32xf32>
    %88 = math.tanh %87 : vector<4x32xf32>
    %89 = vector.extract_strided_slice %88 {offsets = [0, 0], sizes = [4, 4], strides = [1, 1]} : vector<4x32xf32> to vector<4x4xf32>
    %90 = vector.extract_strided_slice %88 {offsets = [0, 4], sizes = [4, 4], strides = [1, 1]} : vector<4x32xf32> to vector<4x4xf32>
    %91 = arith.maximumf %89, %90 : vector<4x4xf32>
    %c0_37 = arith.constant 0 : index
    %c16 = arith.constant 16 : index
    %92 = vector.load %arg26[%c0_37, %c16] : memref<4x32xf32, #tpu.memory_space<vmem>>, vector<4x4xf32>
    tpu.vector_store %arg26[%c0_37, %c16], %91 {strides = array<i32>} : memref<4x32xf32, #tpu.memory_space<vmem>>, vector<4x4xf32>,
    %93 = vector.extract_strided_slice %88 {offsets = [0, 8], sizes = [4, 4], strides = [1, 1]} : vector<4x32xf32> to vector<4x4xf32>
    %94 = vector.extract_strided_slice %88 {offsets = [0, 12], sizes = [4, 4], strides = [1, 1]} : vector<4x32xf32> to vector<4x4xf32>
    %95 = arith.maximumf %93, %94 : vector<4x4xf32>
    %c0_38 = arith.constant 0 : index
    %c20 = arith.constant 20 : index
    %96 = vector.load %arg26[%c0_38, %c20] : memref<4x32xf32, #tpu.memory_space<vmem>>, vector<4x4xf32>
    tpu.vector_store %arg26[%c0_38, %c20], %95 {strides = array<i32>} : memref<4x32xf32, #tpu.memory_space<vmem>>, vector<4x4xf32>,
    %97 = vector.extract_strided_slice %88 {offsets = [0, 16], sizes = [4, 4], strides = [1, 1]} : vector<4x32xf32> to vector<4x4xf32>
    %98 = vector.extract_strided_slice %88 {offsets = [0, 20], sizes = [4, 4], strides = [1, 1]} : vector<4x32xf32> to vector<4x4xf32>
    %99 = arith.maximumf %97, %98 : vector<4x4xf32>
    %c0_39 = arith.constant 0 : index
    %c24 = arith.constant 24 : index
    %100 = vector.load %arg26[%c0_39, %c24] : memref<4x32xf32, #tpu.memory_space<vmem>>, vector<4x4xf32>
    tpu.vector_store %arg26[%c0_39, %c24], %99 {strides = array<i32>} : memref<4x32xf32, #tpu.memory_space<vmem>>, vector<4x4xf32>,
    %101 = vector.extract_strided_slice %88 {offsets = [0, 24], sizes = [4, 4], strides = [1, 1]} : vector<4x32xf32> to vector<4x4xf32>
    %102 = vector.extract_strided_slice %88 {offsets = [0, 28], sizes = [4, 4], strides = [1, 1]} : vector<4x32xf32> to vector<4x4xf32>
    %103 = arith.maximumf %101, %102 : vector<4x4xf32>
    %c0_40 = arith.constant 0 : index
    %c28 = arith.constant 28 : index
    %104 = vector.load %arg26[%c0_40, %c28] : memref<4x32xf32, #tpu.memory_space<vmem>>, vector<4x4xf32>
    tpu.vector_store %arg26[%c0_40, %c28], %103 {strides = array<i32>} : memref<4x32xf32, #tpu.memory_space<vmem>>, vector<4x4xf32>,
    %c0_41 = arith.constant 0 : index
    %c0_42 = arith.constant 0 : index
    %105 = vector.load %arg26[%c0_41, %c0_42] : memref<4x32xf32, #tpu.memory_space<vmem>>, vector<4x32xf32>
    %106 = arith.truncf %105 : vector<4x32xf32> to vector<4x32xbf16>
    %c0_43 = arith.constant 0 : index
    %c0_44 = arith.constant 0 : index
    %107 = vector.load %arg6[%c0_43, %c0_44] : memref<32x16xbf16, #tpu.memory_space<vmem>>, vector<32x16xbf16>
    %cst_45 = arith.constant dense<0.000000e+00> : vector<4x16xf32>
    %108 = tpu.matmul %106, %107, %cst_45 {dimension_numbers = #tpu.dot_dimension_numbers<[1], [0], [0], [1], [0, 0, 1, 1], [], []>} : vector<4x32xbf16>, vector<32x16xbf16>, vector<4x16xf32> -> vector<4x16xf32>
    %c0_46 = arith.constant 0 : index
    %c0_47 = arith.constant 0 : index
    %109 = vector.load %arg7[%c0_46, %c0_47] : memref<1x16xf32, #tpu.memory_space<vmem>>, vector<1x16xf32>
    %110 = vector.broadcast %109 : vector<1x16xf32> to vector<4x16xf32>
    %111 = arith.addf %108, %110 : vector<4x16xf32>
    %112 = math.tanh %111 : vector<4x16xf32>
    %c0_48 = arith.constant 0 : index
    %c32 = arith.constant 32 : index
    %113 = vector.load %arg23[%c0_48, %c32] : memref<4x56xf32, #tpu.memory_space<vmem>>, vector<4x16xf32>
    tpu.vector_store %arg23[%c0_48, %c32], %112 {strides = array<i32>} : memref<4x56xf32, #tpu.memory_space<vmem>>, vector<4x16xf32>,
    %114 = arith.truncf %105 : vector<4x32xf32> to vector<4x32xbf16>
    %c0_49 = arith.constant 0 : index
    %c0_50 = arith.constant 0 : index
    %115 = vector.load %arg8[%c0_49, %c0_50] : memref<32x32xbf16, #tpu.memory_space<vmem>>, vector<32x32xbf16>
    %cst_51 = arith.constant dense<0.000000e+00> : vector<4x32xf32>
    %116 = tpu.matmul %114, %115, %cst_51 {dimension_numbers = #tpu.dot_dimension_numbers<[1], [0], [0], [1], [0, 0, 1, 1], [], []>} : vector<4x32xbf16>, vector<32x32xbf16>, vector<4x32xf32> -> vector<4x32xf32>
    %117 = vector.extract_strided_slice %116 {offsets = [0, 0], sizes = [4, 16], strides = [1, 1]} : vector<4x32xf32> to vector<4x16xf32>
    %c0_52 = arith.constant 0 : index
    %c0_53 = arith.constant 0 : index
    %118 = vector.load %arg9[%c0_52, %c0_53] : memref<1x2xf32, #tpu.memory_space<vmem>>, vector<1x1xf32>
    %119 = vector.broadcast %118 : vector<1x1xf32> to vector<4x16xf32>
    %120 = arith.addf %117, %119 : vector<4x16xf32>
    %cst_54 = arith.constant dense<0.000000e+00> : vector<4xf32>
    %121 = vector.multi_reduction <add>, %120, %cst_54 [1] : vector<4x16xf32> to vector<4xf32>
    %122 = vector.shape_cast %121 : vector<4xf32> to vector<4x1xf32>
    %cst_55 = arith.constant dense<0.000000e+00> : vector<1xf32>
    %123 = vector.multi_reduction <add>, %122, %cst_55 [0] : vector<4x1xf32> to vector<1xf32>
    %124 = vector.shape_cast %123 : vector<1xf32> to vector<1x1xf32>
    %125 = arith.mulf %120, %120 : vector<4x16xf32>
    %cst_56 = arith.constant dense<0.000000e+00> : vector<4xf32>
    %126 = vector.multi_reduction <add>, %125, %cst_56 [1] : vector<4x16xf32> to vector<4xf32>
    %127 = vector.shape_cast %126 : vector<4xf32> to vector<4x1xf32>
    %cst_57 = arith.constant dense<0.000000e+00> : vector<1xf32>
    %128 = vector.multi_reduction <add>, %127, %cst_57 [0] : vector<4x1xf32> to vector<1xf32>
    %129 = vector.shape_cast %128 : vector<1xf32> to vector<1x1xf32>
    %cst_58 = arith.constant 1.562500e-02 : f32
    %130 = vector.broadcast %cst_58 : f32 to vector<1x1xf32>
    %131 = arith.mulf %124, %130 : vector<1x1xf32>
    %cst_59 = arith.constant 1.562500e-02 : f32
    %132 = vector.broadcast %cst_59 : f32 to vector<1x1xf32>
    %133 = arith.mulf %129, %132 : vector<1x1xf32>
    %134 = arith.mulf %131, %131 : vector<1x1xf32>
    %135 = arith.subf %133, %134 : vector<1x1xf32>
    %cst_60 = arith.constant 0.000000e+00 : f32
    %136 = vector.broadcast %cst_60 : f32 to vector<1x1xf32>
    %137 = arith.maximumf %135, %136 : vector<1x1xf32>
    %cst_61 = arith.constant 9.99999974E-6 : f32
    %138 = vector.broadcast %cst_61 : f32 to vector<1x1xf32>
    %139 = arith.addf %137, %138 : vector<1x1xf32>
    %140 = math.rsqrt %139 : vector<1x1xf32>
    %c0_62 = arith.constant 0 : index
    %c0_63 = arith.constant 0 : index
    %141 = vector.load %arg10[%c0_62, %c0_63] : memref<1x2xf32, #tpu.memory_space<vmem>>, vector<1x1xf32>
    %142 = arith.mulf %140, %141 : vector<1x1xf32>
    %c0_64 = arith.constant 0 : index
    %c0_65 = arith.constant 0 : index
    %143 = vector.load %arg11[%c0_64, %c0_65] : memref<1x2xf32, #tpu.memory_space<vmem>>, vector<1x1xf32>
    %144 = arith.mulf %131, %142 : vector<1x1xf32>
    %145 = arith.subf %143, %144 : vector<1x1xf32>
    %146 = vector.broadcast %142 : vector<1x1xf32> to vector<4x16xf32>
    %147 = arith.mulf %120, %146 : vector<4x16xf32>
    %148 = vector.broadcast %145 : vector<1x1xf32> to vector<4x16xf32>
    %149 = arith.addf %147, %148 : vector<4x16xf32>
    %150 = math.tanh %149 : vector<4x16xf32>
    %151 = vector.extract_strided_slice %150 {offsets = [0, 0], sizes = [4, 4], strides = [1, 1]} : vector<4x16xf32> to vector<4x4xf32>
    %152 = vector.extract_strided_slice %150 {offsets = [0, 4], sizes = [4, 4], strides = [1, 1]} : vector<4x16xf32> to vector<4x4xf32>
    %153 = arith.maximumf %151, %152 : vector<4x4xf32>
    %c0_66 = arith.constant 0 : index
    %c0_67 = arith.constant 0 : index
    %154 = vector.load %arg27[%c0_66, %c0_67] : memref<4x16xf32, #tpu.memory_space<vmem>>, vector<4x4xf32>
    tpu.vector_store %arg27[%c0_66, %c0_67], %153 {strides = array<i32>} : memref<4x16xf32, #tpu.memory_space<vmem>>, vector<4x4xf32>,
    %155 = vector.extract_strided_slice %150 {offsets = [0, 8], sizes = [4, 4], strides = [1, 1]} : vector<4x16xf32> to vector<4x4xf32>
    %156 = vector.extract_strided_slice %150 {offsets = [0, 12], sizes = [4, 4], strides = [1, 1]} : vector<4x16xf32> to vector<4x4xf32>
    %157 = arith.maximumf %155, %156 : vector<4x4xf32>
    %c0_68 = arith.constant 0 : index
    %c4_69 = arith.constant 4 : index
    %158 = vector.load %arg27[%c0_68, %c4_69] : memref<4x16xf32, #tpu.memory_space<vmem>>, vector<4x4xf32>
    tpu.vector_store %arg27[%c0_68, %c4_69], %157 {strides = array<i32>} : memref<4x16xf32, #tpu.memory_space<vmem>>, vector<4x4xf32>,
    %159 = vector.extract_strided_slice %116 {offsets = [0, 16], sizes = [4, 16], strides = [1, 1]} : vector<4x32xf32> to vector<4x16xf32>
    %c0_70 = arith.constant 0 : index
    %c1_71 = arith.constant 1 : index
    %160 = vector.load %arg9[%c0_70, %c1_71] : memref<1x2xf32, #tpu.memory_space<vmem>>, vector<1x1xf32>
    %161 = vector.broadcast %160 : vector<1x1xf32> to vector<4x16xf32>
    %162 = arith.addf %159, %161 : vector<4x16xf32>
    %cst_72 = arith.constant dense<0.000000e+00> : vector<4xf32>
    %163 = vector.multi_reduction <add>, %162, %cst_72 [1] : vector<4x16xf32> to vector<4xf32>
    %164 = vector.shape_cast %163 : vector<4xf32> to vector<4x1xf32>
    %cst_73 = arith.constant dense<0.000000e+00> : vector<1xf32>
    %165 = vector.multi_reduction <add>, %164, %cst_73 [0] : vector<4x1xf32> to vector<1xf32>
    %166 = vector.shape_cast %165 : vector<1xf32> to vector<1x1xf32>
    %167 = arith.mulf %162, %162 : vector<4x16xf32>
    %cst_74 = arith.constant dense<0.000000e+00> : vector<4xf32>
    %168 = vector.multi_reduction <add>, %167, %cst_74 [1] : vector<4x16xf32> to vector<4xf32>
    %169 = vector.shape_cast %168 : vector<4xf32> to vector<4x1xf32>
    %cst_75 = arith.constant dense<0.000000e+00> : vector<1xf32>
    %170 = vector.multi_reduction <add>, %169, %cst_75 [0] : vector<4x1xf32> to vector<1xf32>
    %171 = vector.shape_cast %170 : vector<1xf32> to vector<1x1xf32>
    %cst_76 = arith.constant 1.562500e-02 : f32
    %172 = vector.broadcast %cst_76 : f32 to vector<1x1xf32>
    %173 = arith.mulf %166, %172 : vector<1x1xf32>
    %cst_77 = arith.constant 1.562500e-02 : f32
    %174 = vector.broadcast %cst_77 : f32 to vector<1x1xf32>
    %175 = arith.mulf %171, %174 : vector<1x1xf32>
    %176 = arith.mulf %173, %173 : vector<1x1xf32>
    %177 = arith.subf %175, %176 : vector<1x1xf32>
    %cst_78 = arith.constant 0.000000e+00 : f32
    %178 = vector.broadcast %cst_78 : f32 to vector<1x1xf32>
    %179 = arith.maximumf %177, %178 : vector<1x1xf32>
    %cst_79 = arith.constant 9.99999974E-6 : f32
    %180 = vector.broadcast %cst_79 : f32 to vector<1x1xf32>
    %181 = arith.addf %179, %180 : vector<1x1xf32>
    %182 = math.rsqrt %181 : vector<1x1xf32>
    %c0_80 = arith.constant 0 : index
    %c1_81 = arith.constant 1 : index
    %183 = vector.load %arg10[%c0_80, %c1_81] : memref<1x2xf32, #tpu.memory_space<vmem>>, vector<1x1xf32>
    %184 = arith.mulf %182, %183 : vector<1x1xf32>
    %c0_82 = arith.constant 0 : index
    %c1_83 = arith.constant 1 : index
    %185 = vector.load %arg11[%c0_82, %c1_83] : memref<1x2xf32, #tpu.memory_space<vmem>>, vector<1x1xf32>
    %186 = arith.mulf %173, %184 : vector<1x1xf32>
    %187 = arith.subf %185, %186 : vector<1x1xf32>
    %188 = vector.broadcast %184 : vector<1x1xf32> to vector<4x16xf32>
    %189 = arith.mulf %162, %188 : vector<4x16xf32>
    %190 = vector.broadcast %187 : vector<1x1xf32> to vector<4x16xf32>
    %191 = arith.addf %189, %190 : vector<4x16xf32>
    %192 = math.tanh %191 : vector<4x16xf32>
    %193 = vector.extract_strided_slice %192 {offsets = [0, 0], sizes = [4, 4], strides = [1, 1]} : vector<4x16xf32> to vector<4x4xf32>
    %194 = vector.extract_strided_slice %192 {offsets = [0, 4], sizes = [4, 4], strides = [1, 1]} : vector<4x16xf32> to vector<4x4xf32>
    %195 = arith.maximumf %193, %194 : vector<4x4xf32>
    %c0_84 = arith.constant 0 : index
    %c8_85 = arith.constant 8 : index
    %196 = vector.load %arg27[%c0_84, %c8_85] : memref<4x16xf32, #tpu.memory_space<vmem>>, vector<4x4xf32>
    tpu.vector_store %arg27[%c0_84, %c8_85], %195 {strides = array<i32>} : memref<4x16xf32, #tpu.memory_space<vmem>>, vector<4x4xf32>,
    %197 = vector.extract_strided_slice %192 {offsets = [0, 8], sizes = [4, 4], strides = [1, 1]} : vector<4x16xf32> to vector<4x4xf32>
    %198 = vector.extract_strided_slice %192 {offsets = [0, 12], sizes = [4, 4], strides = [1, 1]} : vector<4x16xf32> to vector<4x4xf32>
    %199 = arith.maximumf %197, %198 : vector<4x4xf32>
    %c0_86 = arith.constant 0 : index
    %c12_87 = arith.constant 12 : index
    %200 = vector.load %arg27[%c0_86, %c12_87] : memref<4x16xf32, #tpu.memory_space<vmem>>, vector<4x4xf32>
    tpu.vector_store %arg27[%c0_86, %c12_87], %199 {strides = array<i32>} : memref<4x16xf32, #tpu.memory_space<vmem>>, vector<4x4xf32>,
    %c0_88 = arith.constant 0 : index
    %c0_89 = arith.constant 0 : index
    %201 = vector.load %arg27[%c0_88, %c0_89] : memref<4x16xf32, #tpu.memory_space<vmem>>, vector<4x16xf32>
    %202 = arith.truncf %201 : vector<4x16xf32> to vector<4x16xbf16>
    %c0_90 = arith.constant 0 : index
    %c0_91 = arith.constant 0 : index
    %203 = vector.load %arg12[%c0_90, %c0_91] : memref<16x8xbf16, #tpu.memory_space<vmem>>, vector<16x8xbf16>
    %cst_92 = arith.constant dense<0.000000e+00> : vector<4x8xf32>
    %204 = tpu.matmul %202, %203, %cst_92 {dimension_numbers = #tpu.dot_dimension_numbers<[1], [0], [0], [1], [0, 0, 1, 1], [], []>} : vector<4x16xbf16>, vector<16x8xbf16>, vector<4x8xf32> -> vector<4x8xf32>
    %c0_93 = arith.constant 0 : index
    %c0_94 = arith.constant 0 : index
    %205 = vector.load %arg13[%c0_93, %c0_94] : memref<1x8xf32, #tpu.memory_space<vmem>>, vector<1x8xf32>
    %206 = vector.broadcast %205 : vector<1x8xf32> to vector<4x8xf32>
    %207 = arith.addf %204, %206 : vector<4x8xf32>
    %208 = math.tanh %207 : vector<4x8xf32>
    %c0_95 = arith.constant 0 : index
    %c48 = arith.constant 48 : index
    %209 = vector.load %arg23[%c0_95, %c48] : memref<4x56xf32, #tpu.memory_space<vmem>>, vector<4x8xf32>
    tpu.vector_store %arg23[%c0_95, %c48], %208 {strides = array<i32>} : memref<4x56xf32, #tpu.memory_space<vmem>>, vector<4x8xf32>,
    %c0_96 = arith.constant 0 : index
    %c0_97 = arith.constant 0 : index
    %210 = vector.load %arg23[%c0_96, %c0_97] : memref<4x56xf32, #tpu.memory_space<vmem>>, vector<4x56xf32>
    %211 = arith.truncf %210 : vector<4x56xf32> to vector<4x56xbf16>
    %212 = vector.extract_strided_slice %210 {offsets = [0, 0], sizes = [4, 4], strides = [1, 1]} : vector<4x56xf32> to vector<4x4xf32>
    %c0_98 = arith.constant 0 : index
    %c0_99 = arith.constant 0 : index
    %c0_100 = arith.constant 0 : index
    %213 = vector.load %arg24[%c0_98, %c0_99, %c0_100] : memref<4x14x4xf32, #tpu.memory_space<vmem>>, vector<4x1x4xf32>
    %214 = vector.shape_cast %213 : vector<4x1x4xf32> to vector<4x4xf32>
    %215 = vector.shape_cast %212 : vector<4x4xf32> to vector<4x1x4xf32>
    tpu.vector_store %arg24[%c0_98, %c0_99, %c0_100], %215 {strides = array<i32>} : memref<4x14x4xf32, #tpu.memory_space<vmem>>, vector<4x1x4xf32>,
    %216 = vector.extract_strided_slice %210 {offsets = [0, 4], sizes = [4, 4], strides = [1, 1]} : vector<4x56xf32> to vector<4x4xf32>
    %c0_101 = arith.constant 0 : index
    %c1_102 = arith.constant 1 : index
    %c0_103 = arith.constant 0 : index
    %217 = vector.load %arg24[%c0_101, %c1_102, %c0_103] : memref<4x14x4xf32, #tpu.memory_space<vmem>>, vector<4x1x4xf32>
    %218 = vector.shape_cast %217 : vector<4x1x4xf32> to vector<4x4xf32>
    %219 = vector.shape_cast %216 : vector<4x4xf32> to vector<4x1x4xf32>
    tpu.vector_store %arg24[%c0_101, %c1_102, %c0_103], %219 {strides = array<i32>} : memref<4x14x4xf32, #tpu.memory_space<vmem>>, vector<4x1x4xf32>,
    %220 = vector.extract_strided_slice %210 {offsets = [0, 8], sizes = [4, 4], strides = [1, 1]} : vector<4x56xf32> to vector<4x4xf32>
    %c0_104 = arith.constant 0 : index
    %c2 = arith.constant 2 : index
    %c0_105 = arith.constant 0 : index
    %221 = vector.load %arg24[%c0_104, %c2, %c0_105] : memref<4x14x4xf32, #tpu.memory_space<vmem>>, vector<4x1x4xf32>
    %222 = vector.shape_cast %221 : vector<4x1x4xf32> to vector<4x4xf32>
    %223 = vector.shape_cast %220 : vector<4x4xf32> to vector<4x1x4xf32>
    tpu.vector_store %arg24[%c0_104, %c2, %c0_105], %223 {strides = array<i32>} : memref<4x14x4xf32, #tpu.memory_space<vmem>>, vector<4x1x4xf32>,
    %224 = vector.extract_strided_slice %210 {offsets = [0, 12], sizes = [4, 4], strides = [1, 1]} : vector<4x56xf32> to vector<4x4xf32>
    %c0_106 = arith.constant 0 : index
    %c3 = arith.constant 3 : index
    %c0_107 = arith.constant 0 : index
    %225 = vector.load %arg24[%c0_106, %c3, %c0_107] : memref<4x14x4xf32, #tpu.memory_space<vmem>>, vector<4x1x4xf32>
    %226 = vector.shape_cast %225 : vector<4x1x4xf32> to vector<4x4xf32>
    %227 = vector.shape_cast %224 : vector<4x4xf32> to vector<4x1x4xf32>
    tpu.vector_store %arg24[%c0_106, %c3, %c0_107], %227 {strides = array<i32>} : memref<4x14x4xf32, #tpu.memory_space<vmem>>, vector<4x1x4xf32>,
    %228 = vector.extract_strided_slice %210 {offsets = [0, 16], sizes = [4, 4], strides = [1, 1]} : vector<4x56xf32> to vector<4x4xf32>
    %c0_108 = arith.constant 0 : index
    %c4_109 = arith.constant 4 : index
    %c0_110 = arith.constant 0 : index
    %229 = vector.load %arg24[%c0_108, %c4_109, %c0_110] : memref<4x14x4xf32, #tpu.memory_space<vmem>>, vector<4x1x4xf32>
    %230 = vector.shape_cast %229 : vector<4x1x4xf32> to vector<4x4xf32>
    %231 = vector.shape_cast %228 : vector<4x4xf32> to vector<4x1x4xf32>
    tpu.vector_store %arg24[%c0_108, %c4_109, %c0_110], %231 {strides = array<i32>} : memref<4x14x4xf32, #tpu.memory_space<vmem>>, vector<4x1x4xf32>,
    %232 = vector.extract_strided_slice %210 {offsets = [0, 20], sizes = [4, 4], strides = [1, 1]} : vector<4x56xf32> to vector<4x4xf32>
    %c0_111 = arith.constant 0 : index
    %c5 = arith.constant 5 : index
    %c0_112 = arith.constant 0 : index
    %233 = vector.load %arg24[%c0_111, %c5, %c0_112] : memref<4x14x4xf32, #tpu.memory_space<vmem>>, vector<4x1x4xf32>
    %234 = vector.shape_cast %233 : vector<4x1x4xf32> to vector<4x4xf32>
    %235 = vector.shape_cast %232 : vector<4x4xf32> to vector<4x1x4xf32>
    tpu.vector_store %arg24[%c0_111, %c5, %c0_112], %235 {strides = array<i32>} : memref<4x14x4xf32, #tpu.memory_space<vmem>>, vector<4x1x4xf32>,
    %236 = vector.extract_strided_slice %210 {offsets = [0, 24], sizes = [4, 4], strides = [1, 1]} : vector<4x56xf32> to vector<4x4xf32>
    %c0_113 = arith.constant 0 : index
    %c6 = arith.constant 6 : index
    %c0_114 = arith.constant 0 : index
    %237 = vector.load %arg24[%c0_113, %c6, %c0_114] : memref<4x14x4xf32, #tpu.memory_space<vmem>>, vector<4x1x4xf32>
    %238 = vector.shape_cast %237 : vector<4x1x4xf32> to vector<4x4xf32>
    %239 = vector.shape_cast %236 : vector<4x4xf32> to vector<4x1x4xf32>
    tpu.vector_store %arg24[%c0_113, %c6, %c0_114], %239 {strides = array<i32>} : memref<4x14x4xf32, #tpu.memory_space<vmem>>, vector<4x1x4xf32>,
    %240 = vector.extract_strided_slice %210 {offsets = [0, 28], sizes = [4, 4], strides = [1, 1]} : vector<4x56xf32> to vector<4x4xf32>
    %c0_115 = arith.constant 0 : index
    %c7 = arith.constant 7 : index
    %c0_116 = arith.constant 0 : index
    %241 = vector.load %arg24[%c0_115, %c7, %c0_116] : memref<4x14x4xf32, #tpu.memory_space<vmem>>, vector<4x1x4xf32>
    %242 = vector.shape_cast %241 : vector<4x1x4xf32> to vector<4x4xf32>
    %243 = vector.shape_cast %240 : vector<4x4xf32> to vector<4x1x4xf32>
    tpu.vector_store %arg24[%c0_115, %c7, %c0_116], %243 {strides = array<i32>} : memref<4x14x4xf32, #tpu.memory_space<vmem>>, vector<4x1x4xf32>,
    %244 = vector.extract_strided_slice %210 {offsets = [0, 32], sizes = [4, 4], strides = [1, 1]} : vector<4x56xf32> to vector<4x4xf32>
    %c0_117 = arith.constant 0 : index
    %c8_118 = arith.constant 8 : index
    %c0_119 = arith.constant 0 : index
    %245 = vector.load %arg24[%c0_117, %c8_118, %c0_119] : memref<4x14x4xf32, #tpu.memory_space<vmem>>, vector<4x1x4xf32>
    %246 = vector.shape_cast %245 : vector<4x1x4xf32> to vector<4x4xf32>
    %247 = vector.shape_cast %244 : vector<4x4xf32> to vector<4x1x4xf32>
    tpu.vector_store %arg24[%c0_117, %c8_118, %c0_119], %247 {strides = array<i32>} : memref<4x14x4xf32, #tpu.memory_space<vmem>>, vector<4x1x4xf32>,
    %248 = vector.extract_strided_slice %210 {offsets = [0, 36], sizes = [4, 4], strides = [1, 1]} : vector<4x56xf32> to vector<4x4xf32>
    %c0_120 = arith.constant 0 : index
    %c9 = arith.constant 9 : index
    %c0_121 = arith.constant 0 : index
    %249 = vector.load %arg24[%c0_120, %c9, %c0_121] : memref<4x14x4xf32, #tpu.memory_space<vmem>>, vector<4x1x4xf32>
    %250 = vector.shape_cast %249 : vector<4x1x4xf32> to vector<4x4xf32>
    %251 = vector.shape_cast %248 : vector<4x4xf32> to vector<4x1x4xf32>
    tpu.vector_store %arg24[%c0_120, %c9, %c0_121], %251 {strides = array<i32>} : memref<4x14x4xf32, #tpu.memory_space<vmem>>, vector<4x1x4xf32>,
    %252 = vector.extract_strided_slice %210 {offsets = [0, 40], sizes = [4, 4], strides = [1, 1]} : vector<4x56xf32> to vector<4x4xf32>
    %c0_122 = arith.constant 0 : index
    %c10 = arith.constant 10 : index
    %c0_123 = arith.constant 0 : index
    %253 = vector.load %arg24[%c0_122, %c10, %c0_123] : memref<4x14x4xf32, #tpu.memory_space<vmem>>, vector<4x1x4xf32>
    %254 = vector.shape_cast %253 : vector<4x1x4xf32> to vector<4x4xf32>
    %255 = vector.shape_cast %252 : vector<4x4xf32> to vector<4x1x4xf32>
    tpu.vector_store %arg24[%c0_122, %c10, %c0_123], %255 {strides = array<i32>} : memref<4x14x4xf32, #tpu.memory_space<vmem>>, vector<4x1x4xf32>,
    %256 = vector.extract_strided_slice %210 {offsets = [0, 44], sizes = [4, 4], strides = [1, 1]} : vector<4x56xf32> to vector<4x4xf32>
    %c0_124 = arith.constant 0 : index
    %c11 = arith.constant 11 : index
    %c0_125 = arith.constant 0 : index
    %257 = vector.load %arg24[%c0_124, %c11, %c0_125] : memref<4x14x4xf32, #tpu.memory_space<vmem>>, vector<4x1x4xf32>
    %258 = vector.shape_cast %257 : vector<4x1x4xf32> to vector<4x4xf32>
    %259 = vector.shape_cast %256 : vector<4x4xf32> to vector<4x1x4xf32>
    tpu.vector_store %arg24[%c0_124, %c11, %c0_125], %259 {strides = array<i32>} : memref<4x14x4xf32, #tpu.memory_space<vmem>>, vector<4x1x4xf32>,
    %260 = vector.extract_strided_slice %210 {offsets = [0, 48], sizes = [4, 4], strides = [1, 1]} : vector<4x56xf32> to vector<4x4xf32>
    %c0_126 = arith.constant 0 : index
    %c12_127 = arith.constant 12 : index
    %c0_128 = arith.constant 0 : index
    %261 = vector.load %arg24[%c0_126, %c12_127, %c0_128] : memref<4x14x4xf32, #tpu.memory_space<vmem>>, vector<4x1x4xf32>
    %262 = vector.shape_cast %261 : vector<4x1x4xf32> to vector<4x4xf32>
    %263 = vector.shape_cast %260 : vector<4x4xf32> to vector<4x1x4xf32>
    tpu.vector_store %arg24[%c0_126, %c12_127, %c0_128], %263 {strides = array<i32>} : memref<4x14x4xf32, #tpu.memory_space<vmem>>, vector<4x1x4xf32>,
    %264 = vector.extract_strided_slice %210 {offsets = [0, 52], sizes = [4, 4], strides = [1, 1]} : vector<4x56xf32> to vector<4x4xf32>
    %c0_129 = arith.constant 0 : index
    %c13 = arith.constant 13 : index
    %c0_130 = arith.constant 0 : index
    %265 = vector.load %arg24[%c0_129, %c13, %c0_130] : memref<4x14x4xf32, #tpu.memory_space<vmem>>, vector<4x1x4xf32>
    %266 = vector.shape_cast %265 : vector<4x1x4xf32> to vector<4x4xf32>
    %267 = vector.shape_cast %264 : vector<4x4xf32> to vector<4x1x4xf32>
    tpu.vector_store %arg24[%c0_129, %c13, %c0_130], %267 {strides = array<i32>} : memref<4x14x4xf32, #tpu.memory_space<vmem>>, vector<4x1x4xf32>,
    %c0_131 = arith.constant 0 : index
    %c0_132 = arith.constant 0 : index
    %c0_133 = arith.constant 0 : index
    %268 = vector.load %arg24[%c0_131, %c0_132, %c0_133] : memref<4x14x4xf32, #tpu.memory_space<vmem>>, vector<4x14x4xf32>
    %269 = arith.truncf %268 : vector<4x14x4xf32> to vector<4x14x4xbf16>
    "tpu.trace_start"() <{level = 10 : i32, message = "bfe,bge->bfg"}> : () -> ()
    %cst_134 = arith.constant dense<0.000000e+00> : vector<4x14x14xf32>
    %270 = tpu.matmul %269, %269, %cst_134 {dimension_numbers = #tpu.dot_dimension_numbers<[2], [2], [1], [1], [0, 0, 0, 1, 1, 1], [0], [0]>} : vector<4x14x4xbf16>, vector<4x14x4xbf16>, vector<4x14x14xf32> -> vector<4x14x14xf32>
    "tpu.trace_stop"() : () -> ()
    %c0_135 = arith.constant 0 : index
    %c0_136 = arith.constant 0 : index
    %c0_137 = arith.constant 0 : index
    %271 = vector.load %arg25[%c0_135, %c0_136, %c0_137] : memref<4x14x14xf32, #tpu.memory_space<vmem>>, vector<4x14x14xf32>
    tpu.vector_store %arg25[%c0_135, %c0_136, %c0_137], %270 {strides = array<i32>} : memref<4x14x14xf32, #tpu.memory_space<vmem>>, vector<4x14x14xf32>,
    %c0_138 = arith.constant 0 : index
    %c0_139 = arith.constant 0 : index
    %272 = vector.load %arg14[%c0_138, %c0_139] : memref<56x32xbf16, #tpu.memory_space<vmem>>, vector<56x32xbf16>
    %cst_140 = arith.constant dense<0.000000e+00> : vector<4x32xf32>
    %273 = tpu.matmul %211, %272, %cst_140 {dimension_numbers = #tpu.dot_dimension_numbers<[1], [0], [0], [1], [0, 0, 1, 1], [], []>} : vector<4x56xbf16>, vector<56x32xbf16>, vector<4x32xf32> -> vector<4x32xf32>
    %c0_141 = arith.constant 0 : index
    %c0_142 = arith.constant 0 : index
    %274 = vector.load %arg16[%c0_141, %c0_142] : memref<1x32xf32, #tpu.memory_space<vmem>>, vector<1x32xf32>
    %275 = vector.broadcast %274 : vector<1x32xf32> to vector<4x32xf32>
    %276 = arith.addf %273, %275 : vector<4x32xf32>
    %c0_143 = arith.constant 0 : index
    %c0_144 = arith.constant 0 : index
    %c1_145 = arith.constant 1 : index
    %277 = vector.load %arg25[%c0_143, %c0_144, %c1_145] : memref<4x14x14xf32, #tpu.memory_space<vmem>>, vector<4x1x13xf32>
    %278 = vector.shape_cast %277 : vector<4x1x13xf32> to vector<4x13xf32>
    %279 = arith.truncf %278 : vector<4x13xf32> to vector<4x13xbf16>
    %c0_146 = arith.constant 0 : index
    %c0_147 = arith.constant 0 : index
    %280 = vector.load %arg15[%c0_146, %c0_147] : memref<91x32xbf16, #tpu.memory_space<vmem>>, vector<13x32xbf16>
    %cst_148 = arith.constant dense<0.000000e+00> : vector<4x32xf32>
    %281 = tpu.matmul %279, %280, %cst_148 {dimension_numbers = #tpu.dot_dimension_numbers<[1], [0], [0], [1], [0, 0, 1, 1], [], []>} : vector<4x13xbf16>, vector<13x32xbf16>, vector<4x32xf32> -> vector<4x32xf32>
    %282 = arith.addf %276, %281 : vector<4x32xf32>
    %c0_149 = arith.constant 0 : index
    %c1_150 = arith.constant 1 : index
    %c2_151 = arith.constant 2 : index
    %283 = vector.load %arg25[%c0_149, %c1_150, %c2_151] : memref<4x14x14xf32, #tpu.memory_space<vmem>>, vector<4x1x12xf32>
    %284 = vector.shape_cast %283 : vector<4x1x12xf32> to vector<4x12xf32>
    %285 = arith.truncf %284 : vector<4x12xf32> to vector<4x12xbf16>
    %c13_152 = arith.constant 13 : index
    %c0_153 = arith.constant 0 : index
    %286 = vector.load %arg15[%c13_152, %c0_153] : memref<91x32xbf16, #tpu.memory_space<vmem>>, vector<12x32xbf16>
    %cst_154 = arith.constant dense<0.000000e+00> : vector<4x32xf32>
    %287 = tpu.matmul %285, %286, %cst_154 {dimension_numbers = #tpu.dot_dimension_numbers<[1], [0], [0], [1], [0, 0, 1, 1], [], []>} : vector<4x12xbf16>, vector<12x32xbf16>, vector<4x32xf32> -> vector<4x32xf32>
    %288 = arith.addf %282, %287 : vector<4x32xf32>
    %c0_155 = arith.constant 0 : index
    %c2_156 = arith.constant 2 : index
    %c3_157 = arith.constant 3 : index
    %289 = vector.load %arg25[%c0_155, %c2_156, %c3_157] : memref<4x14x14xf32, #tpu.memory_space<vmem>>, vector<4x1x11xf32>
    %290 = vector.shape_cast %289 : vector<4x1x11xf32> to vector<4x11xf32>
    %291 = arith.truncf %290 : vector<4x11xf32> to vector<4x11xbf16>
    %c25 = arith.constant 25 : index
    %c0_158 = arith.constant 0 : index
    %292 = vector.load %arg15[%c25, %c0_158] : memref<91x32xbf16, #tpu.memory_space<vmem>>, vector<11x32xbf16>
    %cst_159 = arith.constant dense<0.000000e+00> : vector<4x32xf32>
    %293 = tpu.matmul %291, %292, %cst_159 {dimension_numbers = #tpu.dot_dimension_numbers<[1], [0], [0], [1], [0, 0, 1, 1], [], []>} : vector<4x11xbf16>, vector<11x32xbf16>, vector<4x32xf32> -> vector<4x32xf32>
    %294 = arith.addf %288, %293 : vector<4x32xf32>
    %c0_160 = arith.constant 0 : index
    %c3_161 = arith.constant 3 : index
    %c4_162 = arith.constant 4 : index
    %295 = vector.load %arg25[%c0_160, %c3_161, %c4_162] : memref<4x14x14xf32, #tpu.memory_space<vmem>>, vector<4x1x10xf32>
    %296 = vector.shape_cast %295 : vector<4x1x10xf32> to vector<4x10xf32>
    %297 = arith.truncf %296 : vector<4x10xf32> to vector<4x10xbf16>
    %c36 = arith.constant 36 : index
    %c0_163 = arith.constant 0 : index
    %298 = vector.load %arg15[%c36, %c0_163] : memref<91x32xbf16, #tpu.memory_space<vmem>>, vector<10x32xbf16>
    %cst_164 = arith.constant dense<0.000000e+00> : vector<4x32xf32>
    %299 = tpu.matmul %297, %298, %cst_164 {dimension_numbers = #tpu.dot_dimension_numbers<[1], [0], [0], [1], [0, 0, 1, 1], [], []>} : vector<4x10xbf16>, vector<10x32xbf16>, vector<4x32xf32> -> vector<4x32xf32>
    %300 = arith.addf %294, %299 : vector<4x32xf32>
    %c0_165 = arith.constant 0 : index
    %c4_166 = arith.constant 4 : index
    %c5_167 = arith.constant 5 : index
    %301 = vector.load %arg25[%c0_165, %c4_166, %c5_167] : memref<4x14x14xf32, #tpu.memory_space<vmem>>, vector<4x1x9xf32>
    %302 = vector.shape_cast %301 : vector<4x1x9xf32> to vector<4x9xf32>
    %303 = arith.truncf %302 : vector<4x9xf32> to vector<4x9xbf16>
    %c46 = arith.constant 46 : index
    %c0_168 = arith.constant 0 : index
    %304 = vector.load %arg15[%c46, %c0_168] : memref<91x32xbf16, #tpu.memory_space<vmem>>, vector<9x32xbf16>
    %cst_169 = arith.constant dense<0.000000e+00> : vector<4x32xf32>
    %305 = tpu.matmul %303, %304, %cst_169 {dimension_numbers = #tpu.dot_dimension_numbers<[1], [0], [0], [1], [0, 0, 1, 1], [], []>} : vector<4x9xbf16>, vector<9x32xbf16>, vector<4x32xf32> -> vector<4x32xf32>
    %306 = arith.addf %300, %305 : vector<4x32xf32>
    %c0_170 = arith.constant 0 : index
    %c5_171 = arith.constant 5 : index
    %c6_172 = arith.constant 6 : index
    %307 = vector.load %arg25[%c0_170, %c5_171, %c6_172] : memref<4x14x14xf32, #tpu.memory_space<vmem>>, vector<4x1x8xf32>
    %308 = vector.shape_cast %307 : vector<4x1x8xf32> to vector<4x8xf32>
    %309 = arith.truncf %308 : vector<4x8xf32> to vector<4x8xbf16>
    %c55 = arith.constant 55 : index
    %c0_173 = arith.constant 0 : index
    %310 = vector.load %arg15[%c55, %c0_173] : memref<91x32xbf16, #tpu.memory_space<vmem>>, vector<8x32xbf16>
    %cst_174 = arith.constant dense<0.000000e+00> : vector<4x32xf32>
    %311 = tpu.matmul %309, %310, %cst_174 {dimension_numbers = #tpu.dot_dimension_numbers<[1], [0], [0], [1], [0, 0, 1, 1], [], []>} : vector<4x8xbf16>, vector<8x32xbf16>, vector<4x32xf32> -> vector<4x32xf32>
    %312 = arith.addf %306, %311 : vector<4x32xf32>
    %c0_175 = arith.constant 0 : index
    %c6_176 = arith.constant 6 : index
    %c7_177 = arith.constant 7 : index
    %313 = vector.load %arg25[%c0_175, %c6_176, %c7_177] : memref<4x14x14xf32, #tpu.memory_space<vmem>>, vector<4x1x7xf32>
    %314 = vector.shape_cast %313 : vector<4x1x7xf32> to vector<4x7xf32>
    %315 = arith.truncf %314 : vector<4x7xf32> to vector<4x7xbf16>
    %c63 = arith.constant 63 : index
    %c0_178 = arith.constant 0 : index
    %316 = vector.load %arg15[%c63, %c0_178] : memref<91x32xbf16, #tpu.memory_space<vmem>>, vector<7x32xbf16>
    %cst_179 = arith.constant dense<0.000000e+00> : vector<4x32xf32>
    %317 = tpu.matmul %315, %316, %cst_179 {dimension_numbers = #tpu.dot_dimension_numbers<[1], [0], [0], [1], [0, 0, 1, 1], [], []>} : vector<4x7xbf16>, vector<7x32xbf16>, vector<4x32xf32> -> vector<4x32xf32>
    %318 = arith.addf %312, %317 : vector<4x32xf32>
    %c0_180 = arith.constant 0 : index
    %c7_181 = arith.constant 7 : index
    %c8_182 = arith.constant 8 : index
    %319 = vector.load %arg25[%c0_180, %c7_181, %c8_182] : memref<4x14x14xf32, #tpu.memory_space<vmem>>, vector<4x1x6xf32>
    %320 = vector.shape_cast %319 : vector<4x1x6xf32> to vector<4x6xf32>
    %321 = arith.truncf %320 : vector<4x6xf32> to vector<4x6xbf16>
    %c70 = arith.constant 70 : index
    %c0_183 = arith.constant 0 : index
    %322 = vector.load %arg15[%c70, %c0_183] : memref<91x32xbf16, #tpu.memory_space<vmem>>, vector<6x32xbf16>
    %cst_184 = arith.constant dense<0.000000e+00> : vector<4x32xf32>
    %323 = tpu.matmul %321, %322, %cst_184 {dimension_numbers = #tpu.dot_dimension_numbers<[1], [0], [0], [1], [0, 0, 1, 1], [], []>} : vector<4x6xbf16>, vector<6x32xbf16>, vector<4x32xf32> -> vector<4x32xf32>
    %324 = arith.addf %318, %323 : vector<4x32xf32>
    %c0_185 = arith.constant 0 : index
    %c8_186 = arith.constant 8 : index
    %c9_187 = arith.constant 9 : index
    %325 = vector.load %arg25[%c0_185, %c8_186, %c9_187] : memref<4x14x14xf32, #tpu.memory_space<vmem>>, vector<4x1x5xf32>
    %326 = vector.shape_cast %325 : vector<4x1x5xf32> to vector<4x5xf32>
    %327 = arith.truncf %326 : vector<4x5xf32> to vector<4x5xbf16>
    %c76 = arith.constant 76 : index
    %c0_188 = arith.constant 0 : index
    %328 = vector.load %arg15[%c76, %c0_188] : memref<91x32xbf16, #tpu.memory_space<vmem>>, vector<5x32xbf16>
    %cst_189 = arith.constant dense<0.000000e+00> : vector<4x32xf32>
    %329 = tpu.matmul %327, %328, %cst_189 {dimension_numbers = #tpu.dot_dimension_numbers<[1], [0], [0], [1], [0, 0, 1, 1], [], []>} : vector<4x5xbf16>, vector<5x32xbf16>, vector<4x32xf32> -> vector<4x32xf32>
    %330 = arith.addf %324, %329 : vector<4x32xf32>
    %c0_190 = arith.constant 0 : index
    %c9_191 = arith.constant 9 : index
    %c10_192 = arith.constant 10 : index
    %331 = vector.load %arg25[%c0_190, %c9_191, %c10_192] : memref<4x14x14xf32, #tpu.memory_space<vmem>>, vector<4x1x4xf32>
    %332 = vector.shape_cast %331 : vector<4x1x4xf32> to vector<4x4xf32>
    %333 = arith.truncf %332 : vector<4x4xf32> to vector<4x4xbf16>
    %c81 = arith.constant 81 : index
    %c0_193 = arith.constant 0 : index
    %334 = vector.load %arg15[%c81, %c0_193] : memref<91x32xbf16, #tpu.memory_space<vmem>>, vector<4x32xbf16>
    %cst_194 = arith.constant dense<0.000000e+00> : vector<4x32xf32>
    %335 = tpu.matmul %333, %334, %cst_194 {dimension_numbers = #tpu.dot_dimension_numbers<[1], [0], [0], [1], [0, 0, 1, 1], [], []>} : vector<4x4xbf16>, vector<4x32xbf16>, vector<4x32xf32> -> vector<4x32xf32>
    %336 = arith.addf %330, %335 : vector<4x32xf32>
    %c0_195 = arith.constant 0 : index
    %c10_196 = arith.constant 10 : index
    %c11_197 = arith.constant 11 : index
    %337 = vector.load %arg25[%c0_195, %c10_196, %c11_197] : memref<4x14x14xf32, #tpu.memory_space<vmem>>, vector<4x1x3xf32>
    %338 = vector.shape_cast %337 : vector<4x1x3xf32> to vector<4x3xf32>
    %339 = arith.truncf %338 : vector<4x3xf32> to vector<4x3xbf16>
    %c85 = arith.constant 85 : index
    %c0_198 = arith.constant 0 : index
    %340 = vector.load %arg15[%c85, %c0_198] : memref<91x32xbf16, #tpu.memory_space<vmem>>, vector<3x32xbf16>
    %cst_199 = arith.constant dense<0.000000e+00> : vector<4x32xf32>
    %341 = tpu.matmul %339, %340, %cst_199 {dimension_numbers = #tpu.dot_dimension_numbers<[1], [0], [0], [1], [0, 0, 1, 1], [], []>} : vector<4x3xbf16>, vector<3x32xbf16>, vector<4x32xf32> -> vector<4x32xf32>
    %342 = arith.addf %336, %341 : vector<4x32xf32>
    %c0_200 = arith.constant 0 : index
    %c11_201 = arith.constant 11 : index
    %c12_202 = arith.constant 12 : index
    %343 = vector.load %arg25[%c0_200, %c11_201, %c12_202] : memref<4x14x14xf32, #tpu.memory_space<vmem>>, vector<4x1x2xf32>
    %344 = vector.shape_cast %343 : vector<4x1x2xf32> to vector<4x2xf32>
    %345 = arith.truncf %344 : vector<4x2xf32> to vector<4x2xbf16>
    %c88 = arith.constant 88 : index
    %c0_203 = arith.constant 0 : index
    %346 = vector.load %arg15[%c88, %c0_203] : memref<91x32xbf16, #tpu.memory_space<vmem>>, vector<2x32xbf16>
    %cst_204 = arith.constant dense<0.000000e+00> : vector<4x32xf32>
    %347 = tpu.matmul %345, %346, %cst_204 {dimension_numbers = #tpu.dot_dimension_numbers<[1], [0], [0], [1], [0, 0, 1, 1], [], []>} : vector<4x2xbf16>, vector<2x32xbf16>, vector<4x32xf32> -> vector<4x32xf32>
    %348 = arith.addf %342, %347 : vector<4x32xf32>
    %c0_205 = arith.constant 0 : index
    %c12_206 = arith.constant 12 : index
    %c13_207 = arith.constant 13 : index
    %349 = vector.load %arg25[%c0_205, %c12_206, %c13_207] : memref<4x14x14xf32, #tpu.memory_space<vmem>>, vector<4x1x1xf32>
    %350 = vector.shape_cast %349 : vector<4x1x1xf32> to vector<4x1xf32>
    %351 = arith.truncf %350 : vector<4x1xf32> to vector<4x1xbf16>
    %c90 = arith.constant 90 : index
    %c0_208 = arith.constant 0 : index
    %352 = vector.load %arg15[%c90, %c0_208] : memref<91x32xbf16, #tpu.memory_space<vmem>>, vector<1x32xbf16>
    %cst_209 = arith.constant dense<0.000000e+00> : vector<4x32xf32>
    %353 = tpu.matmul %351, %352, %cst_209 {dimension_numbers = #tpu.dot_dimension_numbers<[1], [0], [0], [1], [0, 0, 1, 1], [], []>} : vector<4x1xbf16>, vector<1x32xbf16>, vector<4x32xf32> -> vector<4x32xf32>
    %354 = arith.addf %348, %353 : vector<4x32xf32>
    %cst_210 = arith.constant 0.000000e+00 : f32
    %355 = vector.broadcast %cst_210 : f32 to vector<4x32xf32>
    %356 = arith.maximumf %354, %355 : vector<4x32xf32>
    %357 = arith.truncf %356 : vector<4x32xf32> to vector<4x32xbf16>
    %c0_211 = arith.constant 0 : index
    %c0_212 = arith.constant 0 : index
    %358 = vector.load %arg17[%c0_211, %c0_212] : memref<32x16xbf16, #tpu.memory_space<vmem>>, vector<32x16xbf16>
    %cst_213 = arith.constant dense<0.000000e+00> : vector<4x16xf32>
    %359 = tpu.matmul %357, %358, %cst_213 {dimension_numbers = #tpu.dot_dimension_numbers<[1], [0], [0], [1], [0, 0, 1, 1], [], []>} : vector<4x32xbf16>, vector<32x16xbf16>, vector<4x16xf32> -> vector<4x16xf32>
    %c0_214 = arith.constant 0 : index
    %c0_215 = arith.constant 0 : index
    %360 = vector.load %arg18[%c0_214, %c0_215] : memref<1x16xf32, #tpu.memory_space<vmem>>, vector<1x16xf32>
    %361 = vector.broadcast %360 : vector<1x16xf32> to vector<4x16xf32>
    %362 = arith.addf %359, %361 : vector<4x16xf32>
    %cst_216 = arith.constant 0.000000e+00 : f32
    %363 = vector.broadcast %cst_216 : f32 to vector<4x16xf32>
    %364 = arith.maximumf %362, %363 : vector<4x16xf32>
    %c0_217 = arith.constant 0 : index
    %c0_218 = arith.constant 0 : index
    %365 = vector.load %arg19[%c0_217, %c0_218] : memref<1x16xf32, #tpu.memory_space<vmem>>, vector<1x16xf32>
    %366 = vector.broadcast %365 : vector<1x16xf32> to vector<4x16xf32>
    %367 = arith.mulf %364, %366 : vector<4x16xf32>
    %cst_219 = arith.constant dense<0.000000e+00> : vector<4xf32>
    %368 = vector.multi_reduction <add>, %367, %cst_219 [1] : vector<4x16xf32> to vector<4xf32>
    %369 = vector.shape_cast %368 : vector<4xf32> to vector<4x1xf32>
    %c0_220 = arith.constant 0 : index
    %c0_221 = arith.constant 0 : index
    %370 = vector.load %arg20[%c0_220, %c0_221] : memref<1x1xf32, #tpu.memory_space<vmem>>, vector<1x1xf32>
    %371 = vector.broadcast %370 : vector<1x1xf32> to vector<4x1xf32>
    %372 = arith.addf %369, %371 : vector<4x1xf32>
    %cst_222 = arith.constant 0.000000e+00 : f32
    %373 = vector.broadcast %cst_222 : f32 to vector<4x1xf32>
    %374 = arith.subf %373, %372 : vector<4x1xf32>
    %375 = math.exp %374 : vector<4x1xf32>
    %cst_223 = arith.constant 1.000000e+00 : f32
    %376 = vector.broadcast %cst_223 : f32 to vector<4x1xf32>
    %377 = arith.addf %376, %375 : vector<4x1xf32>
    %378 = tpu.reciprocal %377 {approx = true} : vector<4x1xf32> -> vector<4x1xf32>
    %cst_224 = arith.constant 0.000000e+00 : f32
    %379 = vector.broadcast %cst_224 : f32 to vector<4x1xf32>
    %380 = arith.maximumf %378, %379 : vector<4x1xf32>
    %cst_225 = arith.constant 1.000000e+00 : f32
    %381 = vector.broadcast %cst_225 : f32 to vector<4x1xf32>
    %382 = arith.minimumf %380, %381 : vector<4x1xf32>
    %c0_226 = arith.constant 0 : index
    %c0_227 = arith.constant 0 : index
    %383 = vector.load %arg22[%c0_226, %c0_227] : memref<4x1xf32, #tpu.memory_space<vmem>>, vector<4x1xf32>
    tpu.vector_store %arg22[%c0_226, %c0_227], %382 {strides = array<i32>} : memref<4x1xf32, #tpu.memory_space<vmem>>, vector<4x1xf32>,
    %c0_228 = arith.constant 0 : index
    %c0_229 = arith.constant 0 : index
    %384 = vector.load %arg1[%c0_228, %c0_229] : memref<4x1xf32, #tpu.memory_space<vmem>>, vector<4x1xf32>
    %385 = math.log %382 : vector<4x1xf32>
    %cst_230 = arith.constant -1.000000e+02 : f32
    %386 = vector.broadcast %cst_230 : f32 to vector<4x1xf32>
    %387 = arith.maximumf %385, %386 : vector<4x1xf32>
    %cst_231 = arith.constant 1.000000e+00 : f32
    %388 = vector.broadcast %cst_231 : f32 to vector<4x1xf32>
    %389 = arith.subf %388, %382 : vector<4x1xf32>
    %390 = math.log %389 : vector<4x1xf32>
    %cst_232 = arith.constant -1.000000e+02 : f32
    %391 = vector.broadcast %cst_232 : f32 to vector<4x1xf32>
    %392 = arith.maximumf %390, %391 : vector<4x1xf32>
    %393 = arith.mulf %384, %387 : vector<4x1xf32>
    %cst_233 = arith.constant 1.000000e+00 : f32
    %394 = vector.broadcast %cst_233 : f32 to vector<4x1xf32>
    %395 = arith.subf %394, %384 : vector<4x1xf32>
    %396 = arith.mulf %395, %392 : vector<4x1xf32>
    %397 = arith.addf %393, %396 : vector<4x1xf32>
    %cst_234 = arith.constant 0.000000e+00 : f32
    %398 = vector.broadcast %cst_234 : f32 to vector<4x1xf32>
    %399 = arith.subf %398, %397 : vector<4x1xf32>
    %cst_235 = arith.constant dense<0.000000e+00> : vector<1xf32>
    %400 = vector.multi_reduction <add>, %399, %cst_235 [0] : vector<4x1xf32> to vector<1xf32>
    %401 = vector.shape_cast %400 : vector<1xf32> to vector<1x1xf32>
    %cst_236 = arith.constant 2.500000e-01 : f32
    %402 = vector.broadcast %cst_236 : f32 to vector<1x1xf32>
    %403 = arith.mulf %401, %402 : vector<1x1xf32>
    %c0_237 = arith.constant 0 : index
    %c0_238 = arith.constant 0 : index
    %404 = vector.load %arg21[%c0_237, %c0_238] : memref<1x1xf32, #tpu.memory_space<vmem>>, vector<1x1xf32>
    tpu.vector_store %arg21[%c0_237, %c0_238], %403 {strides = array<i32>} : memref<1x1xf32, #tpu.memory_space<vmem>>, vector<1x1xf32>,
    return
  }
}

</mosaic_0001>

<bundles_post_ra>
// kernel: tpu_custom_call.1
= control target key start
LH: loop header
LB: loop body
LE: loop exit
PB: predicated region body
PF: predicated region fallthrough
CT: control target
= control target key end

     0   :  { %s3675_s0 = inlined_call_operand.vmem [shape: f32[4,32], index: 0, kind: input, shape index: {}]   ;;  %s3676_s1 = inlined_call_operand.vmem [shape: f32[4,1], index: 1, kind: input, shape index: {}]   ;;  %s3677_s2 = inlined_call_operand.vmem [shape: bf16[32,64], index: 2, kind: input, shape index: {}]   ;;  %s3678_s3 = inlined_call_operand.vmem [shape: f32[1,2], index: 3, kind: input, shape index: {}]   ;;  %s3679_s4 = inlined_call_operand.vmem [shape: f32[1,2], index: 4, kind: input, shape index: {}]   ;;  %s3680_s5 = inlined_call_operand.vmem [shape: f32[1,2], index: 5, kind: input, shape index: {}]   ;;  %s3681_s6 = inlined_call_operand.vmem [shape: bf16[32,16], index: 6, kind: input, shape index: {}]   ;;  %s3682_s7 = inlined_call_operand.vmem [shape: f32[1,16], index: 7, kind: input, shape index: {}]   ;;  %s3683_s8 = inlined_call_operand.vmem [shape: bf16[32,32], index: 8, kind: input, shape index: {}]   ;;  %s3684_s9 = inlined_call_operand.vmem [shape: f32[1,2], index: 9, kind: input, shape index: {}]   ;;  %s3685_s10 = inlined_call_operand.vmem [shape: f32[1,2], index: 10, kind: input, shape index: {}]   ;;  %s3686_s11 = inlined_call_operand.vmem [shape: f32[1,2], index: 11, kind: input, shape index: {}]   ;;  %s3687_s12 = inlined_call_operand.vmem [shape: bf16[16,8], index: 12, kind: input, shape index: {}]   ;;  %s3688_s13 = inlined_call_operand.vmem [shape: f32[1,8], index: 13, kind: input, shape index: {}]   ;;  %s3689_s14 = inlined_call_operand.vmem [shape: bf16[56,32], index: 14, kind: input, shape index: {}]   ;;  %s3690_s15 = inlined_call_operand.vmem [shape: bf16[91,32], index: 15, kind: input, shape index: {}]   ;;  %s3691_s16 = inlined_call_operand.vmem [shape: f32[1,32], index: 16, kind: input, shape index: {}]   ;;  %s3692_s17 = inlined_call_operand.vmem [shape: bf16[32,16], index: 17, kind: input, shape index: {}]   ;;  %s3693_s18 = inlined_call_operand.vmem [shape: f32[1,16], index: 18, kind: input, shape index: {}]   ;;  %s3694_s19 = inlined_call_operand.vmem [shape: f32[1,16], index: 19, kind: input, shape index: {}]   ;;  %s3695_s20 = inlined_call_operand.<no memory space> [shape: f32[1,1], index: 20, kind: input, shape index: {}]   ;;  %s3696_s21 = inlined_call_operand.hbm [shape: f32[1,1], index: 21, kind: output, shape index: {0}]   ;;  %s3697_s22 = inlined_call_operand.vmem [shape: f32[4,1], index: 22, kind: output, shape index: {1}]  }
   0x1   :  { %3702 = sst [smem:[#allocation11_spill]] %s3675_s0  ;;  %v28_v0 = vstv %s3695_s20 }
   0x2   :  { %3703 = sst [smem:[#allocation12_spill]] %s3676_s1  ;;  %29 = vst [vmem:[#allocation7] sm:$0x1] %v28_v0 }
   0x3   :  { %3704 = sst [smem:[#allocation13_spill]] %s3677_s2 }
   0x4   :  { %3705 = sst [smem:[#allocation14_spill]] %s3678_s3 }
   0x5   :  { %3706 = sst [smem:[#allocation15_spill]] %s3679_s4 }
   0x6   :  { %3707 = sst [smem:[#allocation16_spill]] %s3680_s5 }
   0x7   :  { %3708 = sst [smem:[#allocation17_spill]] %s3681_s6 }
   0x8   :  { %s3709_s4 = sld [smem:[#allocation13_spill]]  ;;  %v2909_v2 = vmov 0.0   ;;  %vm2910_vm0 = vmmov 0   ;;  %s3710_s5 = sld [smem:[#allocation11_spill]]  ;;  %vm94_vm1 = vcmask 261120   ;;  %v2911_v6 = vmov 1  }
   0x9   :  { %2588 = vmatprep.subr.bf16.mxu1 %v2909_v2  ;;  %2660 = vmatprep.subr.bf16.mxu0 %v2909_v2  ;;  %s3711_s25 = sld [smem:[#allocation14_spill]]  ;;  %v2912_v7 = vmov 0  }
   0xa   :  { %2592 = vmatprep.mubr.msk.bf16.mxu1 %vm2910_vm0, %v2909_v2  ;;  %2822 = vset.pattern.permute.xlu0 %v2911_v6 }
   0xb   :  { %2824 = vset.pattern.permute.xlu1 %v2912_v7  ;;  %2662 = vmatprep.mubr.msk.bf16.mxu0 %vm2910_vm0, %v2909_v2 }
   0xe   :  { %v2831_v1 = vld [vmem:[%s3709_s4] sm:$0xff]   ;;  %v2832_v3 = vld [vmem:[%s3709_s4 + $0x8] sm:$0xff]  }
   0xf   :  { %2589 = vmatpush3.bf16.msra.mxu1 %v2831_v1  ;;  %v74_v4 = vld [vmem:[%s3710_s5] sm:$0xf] }
  0x10   :  { %v2480_v5 = vld [vmem:[%s3711_s25] ss:$0 sm:$0xff]  ;;  %2590 = vmatprep.subr.bf16.mxu1 %v2909_v2  ;;  %v77_v8 = vpack.c.bf16 %v74_v4, %v74_v4 }
  0x11   :  { %234 = vperm.xlu0 %2822, %v2480_v5  }
  0x13   :  { %2591 = vmatpush3.bf16.msra.mxu1 %v2832_v3 }
  0x14   :  { %2596 = vmatprep.subr.bf16.mxu1 %v2909_v2 }
  0x15   :  { %2823 = vset.pattern.permute.xlu0 %v2912_v7 }
  0x16   :  { %2593 = vmatmul.mubr.msk.bf16.vlgmr.msra.gmra.mrb[0].mxu1 %vm94_vm1, %v77_v8  ;;  %145 = vperm.xlu0 %2823, %v2480_v5  }
  0x17   :  { %2600 = vmatprep.mubr.msk.bf16.mxu1 %vm2910_vm0, %v2909_v2 }
  0x18   :  { %30 = vsyncpa [#allocation9], 0  ;;  %vm75_vm2 = vcmask 257024   ;;  %s2913_s26 = smov 96   ;;  %vm152_vm3 = vcmask 1043456   ;;  %v184_v47 = vlaneseq  ;;  %s3712_s3 = sld [smem:[#allocation15_spill]] }
  0x19   :  { %76 = vst.msk [vmem:[#allocation2] sm:$0xf] %vm75_vm2, %v74_v4  ;;  %s3713_s30 = sld [smem:[#allocation16_spill]]  ;;  %s2914_s1 = smov 124   ;;  %vm209_vm4 = vcmask 27648   ;;  %vm215_vm5 = vcmask 60448  }
  0x1a   :  { %v3104_v48 = vshrl.u32 %v184_v47, 7  ;;  %s2915_s5 = smov 120   ;;  %s2916_s24 = smov 116   ;;  %vm220_vm6 = vcmask 93248   ;;  %vm225_vm7 = vcmask 126048   ;;  %vm309_vm8 = vcmask 158848  }
  0x1b   :  { %s3714_s2 = sld [smem:[#allocation17_spill]]  ;;  %s2917_s28 = smov 108   ;;  %vm314_vm9 = vcmask 191648   ;;  %vm319_vm10 = vcmask 224448   ;;  %vm324_vm11 = vcmask 257248   ;;  %vm468_vm12 = vcmask 125952  }
  0x1c   :  { %v3110_v50 = vsub.s32 0, %v3104_v48  ;;  %s2918_s29 = smov 112   ;;  %s2920_s4 = smov 104   ;;  %vm399_vm13 = vcmask 388352   ;;  %vm638_vm14 = vcmask 130048   ;;  %vm687_vm15 = vcmask 454016  }
  0x1d   :  { %s2925_s27 = smov 92   ;;  %s2927_s0 = smov 84  }
  0x1e   :  { %v178_v49 = vld [vmem:[%s3712_s3] sm:$0x1]  ;;  %s2928_s23 = smov 76  }
  0x1f   :  { %v180_v53 = vld [vmem:[%s3713_s30] sm:$0x1] }
  0x90   :  { %v235_v9 = vpop.permute.xlu0 %234 }
  0x95   :  { %v146_v10 = vpop.permute.xlu0 %145 }
  0xe9   :  { %v132_v11 = vpop.f32.mrb[0].mxu1 }
  0xea   :  { %v3086_v12 = vadd.f32 %v146_v10, %v132_v11  ;;  %v3088_v13 = vadd.f32 %v235_v9, %v132_v11  ;;  %v2594_v14 = vpop.f32.mrb[1].mxu1 }
  0xeb   :  { %v135_v15 = vpop.f32.mrb[2].mxu1 }
  0xec   :  { %239 = vrot.lane.b32.xlu1 %v3088_v13, %s2913_s26  ;;  %v2595_v16 = vpop.f32.mrb[3].mxu1  ;;  %v160_v17 = vmul.f32 %v3086_v12, %v3086_v12  ;;  %v252_v19 = vmul.f32 %v3088_v13, %v3088_v13  ;;  %v149_v20 = vsel %vm75_vm2, %v3086_v12, 0.0 }
  0xee   :  { %v161_v18 = vsel %vm75_vm2, %v160_v17, 0.0 }
  0xef   :  { %162 = vadd.xlane.f32.xlu0 %v161_v18 }
  0xf0   :  { %254 = vrot.lane.b32.xlu1 %v252_v19, %s2913_s26 }
 0x114   :  { %150 = vadd.xlane.f32.xlu1 %v149_v20 }
 0x15e   :  { %v240_v21 = vpop.permute.xlu1 %239 }
 0x15f   :  { %v242_v22 = vsel %vm75_vm2, %v240_v21, 0.0  ;;  %v274_v21 = vld [vmem:[%s3712_s3] sm:$0x1]  ;;  %s2926_s3 = smov 80  }
 0x160   :  { %243 = vadd.xlane.f32.xlu0 %v242_v22 }
 0x162   :  { %v255_v23 = vpop.permute.xlu1 %254 }
 0x163   :  { %v257_v24 = vsel %vm75_vm2, %v255_v23, 0.0  ;;  %vm720_vm2 = vcmask 24576  }
 0x164   :  { %258 = vadd.xlane.f32.xlu1 %v257_v24  ;;  %v276_v24 = vld [vmem:[%s3713_s30] sm:$0x1]  ;;  %s2919_s30 = smov 100  }
 0x17c   :  { %v163_v25 = vpop.xlane.xlu0 %162 }
 0x17d   :  { %v164_v26 = vsel %vm152_vm3, %v163_v25, 0.0 }
 0x17e   :  { %v165_v27 = vrot.slane %v164_v26, 4 }
 0x180   :  { %v166_v28 = vadd.f32 %v165_v27, %v164_v26 }
 0x182   :  { %v167_v29 = vrot.slane %v166_v28, 2 }
 0x184   :  { %v168_v33 = vadd.f32 %v167_v29, %v166_v28 }
 0x186   :  { %v169_v36 = vrot.slane %v168_v33, 1 }
 0x188   :  { %v170_v39 = vadd.f32 %v169_v36, %v168_v33 }
 0x18a   :  { %v172_v42 = vmul.f32 0.0078125, %v170_v39 }
 0x1a1   :  { %v151_v30 = vpop.xlane.xlu1 %150 }
 0x1a2   :  { %v153_v31 = vsel %vm152_vm3, %v151_v30, 0.0 }
 0x1a3   :  { %v154_v32 = vrot.slane %v153_v31, 4 }
 0x1a5   :  { %v155_v34 = vadd.f32 %v154_v32, %v153_v31 }
 0x1a7   :  { %v156_v35 = vrot.slane %v155_v34, 2 }
 0x1a9   :  { %v157_v37 = vadd.f32 %v156_v35, %v155_v34 }
 0x1ab   :  { %v158_v38 = vrot.slane %v157_v37, 1 }
 0x1ad   :  { %v159_v40 = vadd.f32 %v158_v38, %v157_v37 }
 0x1af   :  { %v171_v41 = vmul.f32 0.0078125, %v159_v40 }
 0x1b1   :  { %v173_v43 = vmul.f32 %v171_v41, %v171_v41 }
 0x1b3   :  { %v174_v44 = vsub.f32 %v172_v42, %v173_v43  ;;  %v2489_v43 = vld [vmem:[%s3684_s9] ss:$0 sm:$0xff] }
 0x1b5   :  { %v175_v45 = vmax.f32 %v174_v44, 0.0 }
 0x1b7   :  { %v176_v46 = vadd.f32 1e-05, %v175_v45 }
 0x1b9   :  { %2857 = vrsqrt.f32 %v176_v46 }
 0x1c3   :  { %v2858_v51 = vpop.eup %2857 }
 0x1c4   :  { %v179_v52 = vmul.f32 %v2858_v51, %v178_v49 }
 0x1c6   :  { %v187_v54 = vrot.slane %v179_v52, %v3110_v50  ;;  %v181_v55 = vmul.f32 %v179_v52, %v171_v41 }
 0x1c8   :  { %189 = vperm.xlu0 %2823, %v187_v54   ;;  %v182_v56 = vsub.f32 %v180_v53, %v181_v55  ;;  %v2835_v54 = vld [vmem:[%s3683_s8] sm:$0xff]  }
 0x1ca   :  { %v197_v57 = vrot.slane %v182_v56, %v3110_v50  ;;  %v2836_v56 = vld [vmem:[%s3683_s8 + $0x8] sm:$0xff]   ;;  %s2930_s8 = smov 125  }
 0x1cc   :  { %199 = vperm.xlu1 %2824, %v197_v57   ;;  %2826 = vset.pattern.permute.xlu0 %v2911_v6 }
 0x1d0   :  { %2825 = vset.pattern.permute.xlu1 %v2911_v6 }
 0x1ed   :  { %v244_v58 = vpop.xlane.xlu0 %243 }
 0x1ee   :  { %v245_v59 = vsel %vm152_vm3, %v244_v58, 0.0 }
 0x1ef   :  { %v246_v60 = vrot.slane %v245_v59, 4 }
 0x1f1   :  { %v247_v61 = vadd.f32 %v246_v60, %v245_v59  ;;  %v259_v62 = vpop.xlane.xlu1 %258 }
 0x1f2   :  { %v260_v63 = vsel %vm152_vm3, %v259_v62, 0.0 }
 0x1f3   :  { %v248_v0 = vrot.slane %v247_v61, 2  ;;  %v261_v1 = vrot.slane %v260_v63, 4 }
 0x1f5   :  { %v249_v3 = vadd.f32 %v248_v0, %v247_v61  ;;  %v262_v4 = vadd.f32 %v261_v1, %v260_v63 }
 0x1f7   :  { %v250_v5 = vrot.slane %v249_v3, 1  ;;  %v263_v8 = vrot.slane %v262_v4, 2 }
 0x1f9   :  { %v251_v9 = vadd.f32 %v250_v5, %v249_v3  ;;  %v264_v10 = vadd.f32 %v263_v8, %v262_v4 }
 0x1fb   :  { %v267_v11 = vmul.f32 0.0078125, %v251_v9  ;;  %v265_v14 = vrot.slane %v264_v10, 1 }
 0x1fd   :  { %v266_v15 = vadd.f32 %v265_v14, %v264_v10  ;;  %v269_v16 = vmul.f32 %v267_v11, %v267_v11 }
 0x1ff   :  { %v268_v17 = vmul.f32 0.0078125, %v266_v15 }
 0x201   :  { %v270_v18 = vsub.f32 %v268_v17, %v269_v16 }
 0x203   :  { %v271_v19 = vmax.f32 %v270_v18, 0.0 }
 0x205   :  { %v272_v20 = vadd.f32 1e-05, %v271_v19 }
 0x207   :  { %2859 = vrsqrt.f32 %v272_v20 }
 0x211   :  { %v2860_v22 = vpop.eup %2859 }
 0x212   :  { %v275_v23 = vmul.f32 %v2860_v22, %v274_v21 }
 0x214   :  { %v283_v25 = vrot.slane %v275_v23, %v3110_v50  ;;  %v277_v26 = vmul.f32 %v275_v23, %v267_v11 }
 0x216   :  { %285 = vperm.xlu1 %2825, %v283_v25   ;;  %v278_v27 = vsub.f32 %v276_v24, %v277_v26 }
 0x218   :  { %v293_v28 = vrot.slane %v278_v27, %v3110_v50 }
 0x21a   :  { %295 = vperm.xlu0 %2826, %v293_v28  }
 0x21e   :  { %2827 = vset.pattern.permute.xlu0 %v2912_v7 }
 0x247   :  { %v190_v29 = vpop.permute.xlu0 %189 }
 0x248   :  { %v192_v30 = vmul.f32 %v190_v29, %v3086_v12  ;;  %v2833_v12 = vld [vmem:[%s3714_s2] sm:$0xff]  }
 0x249   :  { %2597 = vmatpush3.bf16.msra.mxu1 %v2833_v12 }
 0x24a   :  { %2598 = vmatprep.subr.bf16.mxu1 %v2909_v2 }
 0x24b   :  { %v200_v31 = vpop.permute.xlu1 %199 }
 0x24c   :  { %v202_v32 = vadd.f32 %v200_v31, %v192_v30 }
 0x24e   :  { %2861 = vtanh.f32 %v202_v32 }
 0x258   :  { %v2862_v33 = vpop.eup %2861 }
 0x259   :  { %205 = vrot.lane.b32.xlu1 %v2862_v33, %s2914_s1 }
 0x295   :  { %v286_v34 = vpop.permute.xlu1 %285 }
 0x296   :  { %v288_v35 = vmul.f32 %v286_v34, %v3088_v13  ;;  %v2834_v13 = vld [vmem:[%s3714_s2 + $0x8] sm:$0xff]   ;;  %s2922_s2 = smov 48  }
 0x297   :  { %2599 = vmatpush3.bf16.msra.mxu1 %v2834_v13 }
 0x298   :  { %2604 = vmatprep.subr.bf16.mxu1 %v2909_v2 }
 0x299   :  { %v296_v36 = vpop.permute.xlu0 %295 }
 0x29a   :  { %v298_v37 = vadd.f32 %v296_v36, %v288_v35 }
 0x29c   :  { %2863 = vtanh.f32 %v298_v37 }
 0x2a6   :  { %v2864_v38 = vpop.eup %2863 }
 0x2a7   :  { %301 = vrot.lane.b32.xlu1 %v2864_v38, %s2914_s1 }
 0x2cb   :  { %v206_v39 = vpop.permute.xlu1 %205 }
 0x2cc   :  { %v208_v40 = vmax.f32 %v2862_v33, %v206_v39 }
 0x2ce   :  { %217 = vrot.lane.b32.xlu1 %v208_v40, %s2915_s5  ;;  %212 = vrot.lane.b32.xlu0 %v208_v40, %s2914_s1  ;;  %210 = vst.msk [vmem:[#allocation5] sm:$0xf] %vm209_vm4, %v208_v40 }
 0x2d2   :  { %222 = vrot.lane.b32.xlu0 %v208_v40, %s2916_s24  ;;  %v497_v40 = vld [vmem:[%s3685_s10] sm:$0x1] }
 0x319   :  { %v302_v41 = vpop.permute.xlu1 %301 }
 0x31a   :  { %v304_v42 = vmax.f32 %v2864_v38, %v302_v41  ;;  %v499_v41 = vld [vmem:[%s3686_s11] sm:$0x1] }
 0x31c   :  { %311 = vrot.lane.b32.xlu0 %v304_v42, %s2917_s28  ;;  %306 = vrot.lane.b32.xlu1 %v304_v42, %s2918_s29 }
 0x320   :  { %321 = vrot.lane.b32.xlu0 %v304_v42, %s2919_s30  ;;  %316 = vrot.lane.b32.xlu1 %v304_v42, %s2920_s4 }
 0x324   :  { %541 = vperm.xlu1 %2825, %v2489_v43   ;;  %464 = vperm.xlu0 %2827, %v2489_v43  }
 0x328   :  { %2828 = vset.pattern.permute.xlu1 %v2912_v7  ;;  %2829 = vset.pattern.permute.xlu0 %v2911_v6 }
 0x340   :  { %v213_v44 = vpop.permute.xlu0 %212  ;;  %v218_v45 = vpop.permute.xlu1 %217 }
 0x341   :  { %216 = vst.msk [vmem:[#allocation5] sm:$0xf] %vm215_vm5, %v213_v44 }
 0x342   :  { %221 = vst.msk [vmem:[#allocation5] sm:$0xf] %vm220_vm6, %v218_v45 }
 0x344   :  { %v223_v46 = vpop.permute.xlu0 %222 }
 0x345   :  { %226 = vst.msk [vmem:[#allocation5] sm:$0xf] %vm225_vm7, %v223_v46 }
 0x38e   :  { %v312_v47 = vpop.permute.xlu0 %311  ;;  %v307_v49 = vpop.permute.xlu1 %306 }
 0x38f   :  { %310 = vst.msk [vmem:[#allocation5] sm:$0xf] %vm309_vm8, %v307_v49  ;;  %vm1353_vm8 = vsmask.f32 5376 }
 0x390   :  { %315 = vst.msk [vmem:[#allocation5] sm:$0xf] %vm314_vm9, %v312_v47  ;;  %vm1138_vm9 = vcmask 113664  }
 0x392   :  { %v322_v51 = vpop.permute.xlu0 %321  ;;  %v317_v52 = vpop.permute.xlu1 %316 }
 0x393   :  { %320 = vst.msk [vmem:[#allocation5] sm:$0xf] %vm319_vm10, %v317_v52  ;;  %vm1140_vm10 = vcmask 111616  }
 0x394   :  { %325 = vst.msk [vmem:[#allocation5] sm:$0xf] %vm324_vm11, %v322_v51  ;;  %vm1249_vm11 = vcmask 1041409  }
 0x39b   :  { %v326_v53 = vld [vmem:[#allocation5] sm:$0xf] }
 0x39c   :  { %v327_v55 = vpack.c.bf16 %v326_v53, %v326_v53 }
 0x39e   :  { %2601 = vmatmul.mubr.msk.bf16.vlgmr.msra.gmra.mrb[4].mxu1 %vm94_vm1, %v327_v55 }
 0x39f   :  { %2605 = vmatpush3.bf16.msra.mxu1 %v2835_v54  ;;  %2608 = vmatprep.mubr.msk.bf16.mxu1 %vm2910_vm0, %v2909_v2 }
 0x3a0   :  { %2606 = vmatprep.subr.bf16.mxu1 %v2909_v2 }
 0x3a3   :  { %2607 = vmatpush3.bf16.msra.mxu1 %v2836_v56  ;;  %v465_v61 = vpop.permute.xlu0 %464  ;;  %v542_v62 = vpop.permute.xlu1 %541 }
 0x3a4   :  { %2612 = vmatprep.subr.bf16.mxu1 %v2909_v2 }
 0x3a6   :  { %2609 = vmatmul.mubr.msk.bf16.vlgmr.msra.gmra.mrb[8].mxu1 %vm94_vm1, %v327_v55 }
 0x3a7   :  { %2614 = vmatprep.mubr.msk.bf16.mxu1 %vm2910_vm0, %v2909_v2 }
 0x471   :  { %v3172_v57 = vpop.f32.mrb[4].mxu1 }
 0x472   :  { %v2602_v58 = vpop.f32.mrb[5].mxu1 }
 0x473   :  { %v391_v59 = vpop.f32.mrb[6].mxu1 }
 0x474   :  { %v2603_v60 = vpop.f32.mrb[7].mxu1 }
 0x479   :  { %v451_v63 = vpop.f32.mrb[8].mxu1 }
 0x47a   :  { %v3174_v0 = vadd.f32 %v465_v61, %v451_v63  ;;  %v3176_v1 = vadd.f32 %v542_v62, %v451_v63  ;;  %v2610_v3 = vpop.f32.mrb[9].mxu1 }
 0x47b   :  { %v454_v4 = vpop.f32.mrb[10].mxu1 }
 0x47c   :  { %546 = vrot.lane.b32.xlu1 %v3176_v1, %s2918_s29  ;;  %v2611_v5 = vpop.f32.mrb[11].mxu1  ;;  %v469_v8 = vsel %vm468_vm12, %v3174_v0, 0.0  ;;  %v479_v9 = vmul.f32 %v3174_v0, %v3174_v0  ;;  %v559_v10 = vmul.f32 %v3176_v1, %v3176_v1 }
 0x47d   :  { %470 = vadd.xlane.f32.xlu0 %v469_v8 }
 0x47e   :  { %v480_v11 = vsel %vm468_vm12, %v479_v9, 0.0 }
 0x480   :  { %561 = vrot.lane.b32.xlu1 %v559_v10, %s2918_s29 }
 0x481   :  { %481 = vadd.xlane.f32.xlu0 %v480_v11  ;;  %v581_v11 = vld [vmem:[%s3685_s10] sm:$0x1]  ;;  %s3715_s10 = sld [smem:[#allocation12_spill]] }
 0x4ee   :  { %v547_v14 = vpop.permute.xlu1 %546 }
 0x4ef   :  { %v549_v15 = vsel %vm468_vm12, %v547_v14, 0.0 }
 0x4f0   :  { %550 = vadd.xlane.f32.xlu1 %v549_v15 }
 0x4f2   :  { %v562_v16 = vpop.permute.xlu1 %561 }
 0x4f3   :  { %v564_v17 = vsel %vm468_vm12, %v562_v16, 0.0  ;;  %v583_v16 = vld [vmem:[%s3686_s11] sm:$0x1] }
 0x4f4   :  { %565 = vadd.xlane.f32.xlu0 %v564_v17 }
 0x50a   :  { %v471_v18 = vpop.xlane.xlu0 %470 }
 0x50b   :  { %v472_v19 = vsel %vm152_vm3, %v471_v18, 0.0 }
 0x50c   :  { %v473_v20 = vrot.slane %v472_v19, 4 }
 0x50e   :  { %v474_v21 = vadd.f32 %v473_v20, %v472_v19  ;;  %v482_v22 = vpop.xlane.xlu0 %481 }
 0x50f   :  { %v483_v23 = vsel %vm152_vm3, %v482_v22, 0.0 }
 0x510   :  { %v475_v24 = vrot.slane %v474_v21, 2  ;;  %v484_v25 = vrot.slane %v483_v23, 4 }
 0x512   :  { %v476_v26 = vadd.f32 %v475_v24, %v474_v21  ;;  %v485_v27 = vadd.f32 %v484_v25, %v483_v23 }
 0x514   :  { %v477_v28 = vrot.slane %v476_v26, 1  ;;  %v486_v29 = vrot.slane %v485_v27, 2 }
 0x516   :  { %v478_v30 = vadd.f32 %v477_v28, %v476_v26  ;;  %v487_v31 = vadd.f32 %v486_v29, %v485_v27 }
 0x518   :  { %v490_v32 = vmul.f32 0.015625, %v478_v30  ;;  %v488_v33 = vrot.slane %v487_v31, 1 }
 0x51a   :  { %v489_v34 = vadd.f32 %v488_v33, %v487_v31  ;;  %v492_v35 = vmul.f32 %v490_v32, %v490_v32 }
 0x51c   :  { %v491_v36 = vmul.f32 0.015625, %v489_v34 }
 0x51e   :  { %v493_v37 = vsub.f32 %v491_v36, %v492_v35 }
 0x520   :  { %v494_v38 = vmax.f32 %v493_v37, 0.0 }
 0x522   :  { %v495_v39 = vadd.f32 1e-05, %v494_v38 }
 0x524   :  { %2865 = vrsqrt.f32 %v495_v39 }
 0x52e   :  { %v2866_v12 = vpop.eup %2865 }
 0x52f   :  { %v498_v13 = vmul.f32 %v2866_v12, %v497_v40 }
 0x531   :  { %v506_v42 = vrot.slane %v498_v13, %v3110_v50  ;;  %v500_v43 = vmul.f32 %v498_v13, %v490_v32  ;;  %v2490_v13 = vld [vmem:[%s3688_s13] ss:$0 sm:$0xff]  ;;  %s2924_s13 = smov 88  }
 0x533   :  { %508 = vperm.xlu1 %2828, %v506_v42   ;;  %v501_v44 = vsub.f32 %v499_v41, %v500_v43 }
 0x535   :  { %v516_v45 = vrot.slane %v501_v44, %v3110_v50 }
 0x537   :  { %518 = vperm.xlu1 %2828, %v516_v45  }
 0x53b   :  { %2830 = vset.pattern.permute.xlu1 %v2911_v6 }
 0x57d   :  { %v551_v46 = vpop.xlane.xlu1 %550 }
 0x57e   :  { %v552_v47 = vsel %vm152_vm3, %v551_v46, 0.0 }
 0x57f   :  { %v553_v49 = vrot.slane %v552_v47, 4 }
 0x581   :  { %v554_v51 = vadd.f32 %v553_v49, %v552_v47  ;;  %v566_v52 = vpop.xlane.xlu0 %565  ;;  %v2923_v47 = vmov 1966171168  }
 0x582   :  { %v567_v53 = vsel %vm152_vm3, %v566_v52, 0.0  ;;  %v693_v49 = vunpack.c.l.s4 %v2923_v47 }
 0x583   :  { %v555_v54 = vrot.slane %v554_v51, 2  ;;  %v568_v55 = vrot.slane %v567_v53, 4 }
 0x584   :  { %v694_v52 = vunpack.c.0.s8 %v693_v49 }
 0x585   :  { %v556_v56 = vadd.f32 %v555_v54, %v554_v51  ;;  %v569_v58 = vadd.f32 %v568_v55, %v567_v53 }
 0x586   :  { %v697_v53 = vsub.s32 %v694_v52, %v3104_v48 }
 0x587   :  { %v557_v59 = vrot.slane %v556_v56, 1  ;;  %v570_v60 = vrot.slane %v569_v58, 2 }
 0x589   :  { %v558_v61 = vadd.f32 %v557_v59, %v556_v56  ;;  %v571_v62 = vadd.f32 %v570_v60, %v569_v58 }
 0x58b   :  { %v574_v63 = vmul.f32 0.015625, %v558_v61  ;;  %v572_v3 = vrot.slane %v571_v62, 1 }
 0x58d   :  { %v573_v4 = vadd.f32 %v572_v3, %v571_v62  ;;  %v576_v6 = vmul.f32 %v574_v63, %v574_v63 }
 0x58f   :  { %v575_v5 = vmul.f32 0.015625, %v573_v4 }
 0x591   :  { %v577_v8 = vsub.f32 %v575_v5, %v576_v6 }
 0x593   :  { %v578_v9 = vmax.f32 %v577_v8, 0.0 }
 0x595   :  { %v579_v10 = vadd.f32 1e-05, %v578_v9 }
 0x597   :  { %2867 = vrsqrt.f32 %v579_v10 }
 0x5a1   :  { %v2868_v14 = vpop.eup %2867 }
 0x5a2   :  { %v582_v15 = vmul.f32 %v2868_v14, %v581_v11 }
 0x5a4   :  { %v590_v17 = vrot.slane %v582_v15, %v3110_v50  ;;  %v584_v18 = vmul.f32 %v582_v15, %v574_v63 }
 0x5a6   :  { %592 = vperm.xlu0 %2829, %v590_v17   ;;  %v585_v19 = vsub.f32 %v583_v16, %v584_v18 }
 0x5a8   :  { %v600_v20 = vrot.slane %v585_v19, %v3110_v50 }
 0x5aa   :  { %602 = vperm.xlu1 %2830, %v600_v20  }
 0x5b2   :  { %v509_v21 = vpop.permute.xlu1 %508 }
 0x5b3   :  { %v511_v22 = vmul.f32 %v509_v21, %v3174_v0  ;;  %v2481_v0 = vld [vmem:[%s3682_s7] ss:$0 sm:$0xff]  ;;  %s2921_s7 = smov 32  }
 0x5b4   :  { %v389_v33 = vadd.f32 %v2481_v0, %v3172_v57 }
 0x5b6   :  { %v519_v23 = vpop.permute.xlu1 %518 }
 0x5b7   :  { %v521_v24 = vadd.f32 %v519_v23, %v511_v22 }
 0x5b9   :  { %2869 = vtanh.f32 %v521_v24 }
 0x5c3   :  { %v2870_v25 = vpop.eup %2869 }
 0x5c4   :  { %524 = vrot.lane.b32.xlu1 %v2870_v25, %s2914_s1 }
 0x625   :  { %v593_v26 = vpop.permute.xlu0 %592 }
 0x626   :  { %v595_v27 = vmul.f32 %v593_v26, %v3176_v1  ;;  %v2837_v1 = vld [vmem:[%s3687_s12] sm:$0xff]  }
 0x627   :  { %2613 = vmatpush3.bf16.msra.mxu1 %v2837_v1 }
 0x628   :  { %2618 = vmatprep.subr.bf16.mxu1 %v2909_v2 }
 0x629   :  { %v603_v28 = vpop.permute.xlu1 %602 }
 0x62a   :  { %v605_v29 = vadd.f32 %v603_v28, %v595_v27 }
 0x62c   :  { %2871 = vtanh.f32 %v605_v29 }
 0x62d   :  { %2873 = vtanh.f32 %v389_v33 }
 0x636   :  { %v2872_v30 = vpop.eup %2871  ;;  %v525_v31 = vpop.permute.xlu1 %524 }
 0x637   :  { %v527_v32 = vmax.f32 %v2870_v25, %v525_v31  ;;  %608 = vrot.lane.b32.xlu1 %v2872_v30, %s2914_s1  ;;  %v2874_v37 = vpop.eup %2873 }
 0x639   :  { %528 = vst.msk [vmem:[#allocation6] sm:$0xf] %vm209_vm4, %v527_v32  ;;  %vm961_vm4 = vcmask 31744  }
 0x63b   :  { %530 = vrot.lane.b32.xlu1 %v527_v32, %s2914_s1 }
 0x6a9   :  { %v609_v34 = vpop.permute.xlu1 %608 }
 0x6aa   :  { %v611_v35 = vmax.f32 %v2872_v30, %v609_v34 }
 0x6ac   :  { %613 = vrot.lane.b32.xlu1 %v611_v35, %s2915_s5 }
 0x6ad   :  { %v531_v36 = vpop.permute.xlu1 %530 }
 0x6ae   :  { %533 = vst.msk [vmem:[#allocation6] sm:$0xf] %vm215_vm5, %v531_v36  ;;  %vm1183_vm5 = vcmask 457728  }
 0x6b0   :  { %617 = vrot.lane.b32.xlu1 %v611_v35, %s2916_s24 }
 0x6b4   :  { %396 = vrot.lane.b32.xlu1 %v2874_v37, %s2921_s7 }
 0x71e   :  { %v614_v38 = vpop.permute.xlu1 %613 }
 0x71f   :  { %616 = vst.msk [vmem:[#allocation6] sm:$0xf] %vm220_vm6, %v614_v38  ;;  %vm1269_vm6 = vcmask 1045504  }
 0x722   :  { %v618_v57 = vpop.permute.xlu1 %617 }
 0x723   :  { %620 = vst.msk [vmem:[#allocation6] sm:$0xf] %vm225_vm7, %v618_v57  ;;  %vm1270_vm7 = vcmask 1046528  }
 0x726   :  { %v397_v39 = vpop.permute.xlu1 %396 }
 0x727   :  { %400 = vst.msk [vmem:[#allocation2] sm:$0xf] %vm399_vm13, %v397_v39  ;;  %vm1252_vm13 = vcmask 1042434  }
 0x72a   :  { %v621_v40 = vld [vmem:[#allocation6] sm:$0xf] }
 0x72b   :  { %v622_v12 = vpack.c.bf16 %v621_v40, %v621_v40 }
 0x72d   :  { %2615 = vmatmul.mubr.msk.bf16.vlgmr.msra.gmra.mrb[12].mxu1 %vm638_vm14, %v622_v12  ;;  %vm1255_vm14 = vcmask 1043459  }
 0x72e   :  { %2620 = vmatprep.mubr.msk.bf16.mxu1 %vm2910_vm0, %v2909_v2 }
 0x800   :  { %v676_v41 = vpop.f32.mrb[12].mxu1 }
 0x801   :  { %v677_v42 = vadd.f32 %v2490_v13, %v676_v41  ;;  %v2616_v43 = vpop.f32.mrb[13].mxu1 }
 0x802   :  { %v679_v44 = vpop.f32.mrb[14].mxu1 }
 0x803   :  { %2875 = vtanh.f32 %v677_v42  ;;  %v2617_v45 = vpop.f32.mrb[15].mxu1 }
 0x80d   :  { %v2876_v46 = vpop.eup %2875 }
 0x80e   :  { %684 = vrot.lane.b32.xlu0 %v2876_v46, %s2922_s2  ;;  %s2931_s2 = smov 126  }
 0x880   :  { %v685_v51 = vpop.permute.xlu0 %684 }
 0x881   :  { %688 = vst.msk [vmem:[#allocation2] sm:$0xf] %vm687_vm15, %v685_v51  ;;  %vm1458_vm15 = vcmask 1044480  }
 0x888   :  { %v3236_v54 = vld [vmem:[#allocation2] sm:$0xf] }
 0x889   :  { %v698_v55 = vrot.slane %v3236_v54, %v697_v53 }
 0x88b   :  { %v699_v56 = vcombine.high %v698_v55, %v698_v55  ;;  %v706_v58 = vrot.slane %v698_v55, %v697_v53 }
 0x88d   :  { %v713_v59 = vrot.slane %v699_v56, %v697_v53  ;;  %v714_v60 = vcombine.high %v706_v58, %v706_v58  ;;  %v728_v61 = vrot.slane %v706_v58, %v3110_v50  ;;  %721 = vst.msk [vmem:[#allocation3] sm:$0x1] %vm720_vm2, %v706_v58 }
 0x88f   :  { %v715_v62 = vcombine.high %v713_v59, %v713_v59  ;;  %757 = vrot.lane.b32.xlu0 %v728_v61, %s2915_s5  ;;  %741 = vrot.lane.b32.xlu1 %v728_v61, %s2914_s1  ;;  %722 = vst.msk [vmem:[#allocation3 + $0x10] sm:$0x1] %vm720_vm2, %v713_v59  ;;  %723 = vst.msk [vmem:[#allocation3 + $0x20] sm:$0x1] %vm720_vm2, %v714_v60  ;;  %v732_v48 = vrot.slane %v713_v59, %v3110_v50 }
 0x890   :  { %v736_v63 = vrot.slane %v714_v60, %v3110_v50 }
 0x891   :  { %724 = vst.msk [vmem:[#allocation3 + $0x30] sm:$0x1] %vm720_vm2, %v715_v62  ;;  %v740_v3 = vrot.slane %v715_v62, %v3110_v50 }
 0x893   :  { %789 = vrot.lane.b32.xlu0 %v728_v61, %s2918_s29  ;;  %773 = vrot.lane.b32.xlu1 %v728_v61, %s2916_s24 }
 0x897   :  { %821 = vrot.lane.b32.xlu0 %v728_v61, %s2920_s4  ;;  %805 = vrot.lane.b32.xlu1 %v728_v61, %s2917_s28 }
 0x89b   :  { %853 = vrot.lane.b32.xlu0 %v728_v61, %s2913_s26  ;;  %837 = vrot.lane.b32.xlu1 %v728_v61, %s2919_s30 }
 0x89f   :  { %885 = vrot.lane.b32.xlu0 %v728_v61, %s2924_s13  ;;  %869 = vrot.lane.b32.xlu1 %v728_v61, %s2925_s27 }
 0x8a3   :  { %917 = vrot.lane.b32.xlu0 %v728_v61, %s2926_s3  ;;  %901 = vrot.lane.b32.xlu1 %v728_v61, %s2927_s0 }
 0x8a7   :  { %933 = vrot.lane.b32.xlu1 %v728_v61, %s2928_s23  ;;  %743 = vrot.lane.b32.xlu0 %v732_v48, %s2914_s1 }
 0x8ab   :  { %759 = vrot.lane.b32.xlu1 %v732_v48, %s2915_s5  ;;  %775 = vrot.lane.b32.xlu0 %v732_v48, %s2916_s24 }
 0x8af   :  { %791 = vrot.lane.b32.xlu1 %v732_v48, %s2918_s29  ;;  %807 = vrot.lane.b32.xlu0 %v732_v48, %s2917_s28 }
 0x8b3   :  { %823 = vrot.lane.b32.xlu1 %v732_v48, %s2920_s4  ;;  %839 = vrot.lane.b32.xlu0 %v732_v48, %s2919_s30 }
 0x8b7   :  { %855 = vrot.lane.b32.xlu1 %v732_v48, %s2913_s26  ;;  %871 = vrot.lane.b32.xlu0 %v732_v48, %s2925_s27 }
 0x8bb   :  { %887 = vrot.lane.b32.xlu1 %v732_v48, %s2924_s13  ;;  %903 = vrot.lane.b32.xlu0 %v732_v48, %s2927_s0 }
 0x8bf   :  { %919 = vrot.lane.b32.xlu1 %v732_v48, %s2926_s3  ;;  %935 = vrot.lane.b32.xlu0 %v732_v48, %s2928_s23 }
 0x8c3   :  { %745 = vrot.lane.b32.xlu1 %v736_v63, %s2914_s1  ;;  %761 = vrot.lane.b32.xlu0 %v736_v63, %s2915_s5 }
 0x8c7   :  { %777 = vrot.lane.b32.xlu1 %v736_v63, %s2916_s24  ;;  %793 = vrot.lane.b32.xlu0 %v736_v63, %s2918_s29 }
 0x8cb   :  { %809 = vrot.lane.b32.xlu1 %v736_v63, %s2917_s28  ;;  %825 = vrot.lane.b32.xlu0 %v736_v63, %s2920_s4 }
 0x8cf   :  { %841 = vrot.lane.b32.xlu1 %v736_v63, %s2919_s30  ;;  %857 = vrot.lane.b32.xlu0 %v736_v63, %s2913_s26 }
 0x8d3   :  { %873 = vrot.lane.b32.xlu1 %v736_v63, %s2925_s27  ;;  %889 = vrot.lane.b32.xlu0 %v736_v63, %s2924_s13 }
 0x8d7   :  { %905 = vrot.lane.b32.xlu1 %v736_v63, %s2927_s0  ;;  %921 = vrot.lane.b32.xlu0 %v736_v63, %s2926_s3 }
 0x8db   :  { %937 = vrot.lane.b32.xlu1 %v736_v63, %s2928_s23  ;;  %747 = vrot.lane.b32.xlu0 %v740_v3, %s2914_s1 }
 0x8df   :  { %763 = vrot.lane.b32.xlu1 %v740_v3, %s2915_s5  ;;  %779 = vrot.lane.b32.xlu0 %v740_v3, %s2916_s24 }
 0x8e3   :  { %795 = vrot.lane.b32.xlu1 %v740_v3, %s2918_s29  ;;  %811 = vrot.lane.b32.xlu0 %v740_v3, %s2917_s28 }
 0x8e7   :  { %827 = vrot.lane.b32.xlu1 %v740_v3, %s2920_s4  ;;  %843 = vrot.lane.b32.xlu0 %v740_v3, %s2919_s30 }
 0x8eb   :  { %859 = vrot.lane.b32.xlu1 %v740_v3, %s2913_s26  ;;  %875 = vrot.lane.b32.xlu0 %v740_v3, %s2925_s27  ;;  %s2934_s27 = smov 122   ;;  %s2939_s26 = smov 115  }
 0x8ef   :  { %891 = vrot.lane.b32.xlu1 %v740_v3, %s2924_s13  ;;  %907 = vrot.lane.b32.xlu0 %v740_v3, %s2927_s0  ;;  %s2932_s13 = smov 123   ;;  %s2937_s0 = smov 117  }
 0x8f3   :  { %923 = vrot.lane.b32.xlu1 %v740_v3, %s2926_s3  ;;  %939 = vrot.lane.b32.xlu0 %v740_v3, %s2928_s23  ;;  %s2935_s3 = smov 119   ;;  %s2938_s23 = smov 127  }
 0x901   :  { %v758_v50 = vpop.permute.xlu0 %757  ;;  %v742_v4 = vpop.permute.xlu1 %741 }
 0x902   :  { %769 = vst.msk [vmem:[#allocation3 + $0x2] sm:$0x1] %vm720_vm2, %v758_v50  ;;  %753 = vst.msk [vmem:[#allocation3 + $0x1] sm:$0x1] %vm720_vm2, %v742_v4 }
 0x905   :  { %v790_v6 = vpop.permute.xlu0 %789  ;;  %v774_v5 = vpop.permute.xlu1 %773 }
 0x906   :  { %801 = vst.msk [vmem:[#allocation3 + $0x4] sm:$0x1] %vm720_vm2, %v790_v6  ;;  %785 = vst.msk [vmem:[#allocation3 + $0x3] sm:$0x1] %vm720_vm2, %v774_v5 }
 0x909   :  { %v822_v8 = vpop.permute.xlu0 %821  ;;  %v806_v9 = vpop.permute.xlu1 %805 }
 0x90a   :  { %833 = vst.msk [vmem:[#allocation3 + $0x6] sm:$0x1] %vm720_vm2, %v822_v8  ;;  %817 = vst.msk [vmem:[#allocation3 + $0x5] sm:$0x1] %vm720_vm2, %v806_v9 }
 0x90d   :  { %v854_v10 = vpop.permute.xlu0 %853  ;;  %v838_v11 = vpop.permute.xlu1 %837 }
 0x90e   :  { %865 = vst.msk [vmem:[#allocation3 + $0x8] sm:$0x1] %vm720_vm2, %v854_v10  ;;  %849 = vst.msk [vmem:[#allocation3 + $0x7] sm:$0x1] %vm720_vm2, %v838_v11  ;;  %v2838_v11 = vld [vmem:[%s3689_s14] sm:$0xff]  }
 0x911   :  { %v886_v14 = vpop.permute.xlu0 %885  ;;  %v870_v15 = vpop.permute.xlu1 %869 }
 0x912   :  { %897 = vst.msk [vmem:[#allocation3 + $0xa] sm:$0x1] %vm720_vm2, %v886_v14  ;;  %881 = vst.msk [vmem:[#allocation3 + $0x9] sm:$0x1] %vm720_vm2, %v870_v15  ;;  %v2839_v14 = vld [vmem:[%s3689_s14 + $0x8] sm:$0xff]   ;;  %v2840_v15 = vld [vmem:[%s3689_s14 + $0x10] sm:$0xff]  }
 0x915   :  { %v918_v16 = vpop.permute.xlu0 %917  ;;  %v902_v17 = vpop.permute.xlu1 %901  ;;  %v949_v24 = vld [vmem:[#allocation3] sm:$0xff] }
 0x916   :  { %929 = vst.msk [vmem:[#allocation3 + $0xc] sm:$0x1] %vm720_vm2, %v918_v16  ;;  %913 = vst.msk [vmem:[#allocation3 + $0xb] sm:$0x1] %vm720_vm2, %v902_v17  ;;  %v2841_v16 = vld [vmem:[%s3689_s14 + $0x18] ss:$0 sps:$4 sm:$0xff]  }
 0x917   :  { %v1188_v17 = vsel %vm152_vm3, %v2841_v16, 0 }
 0x919   :  { %v934_v18 = vpop.permute.xlu1 %933  ;;  %v744_v19 = vpop.permute.xlu0 %743 }
 0x91a   :  { %945 = vst.msk [vmem:[#allocation3 + $0xd] sm:$0x1] %vm720_vm2, %v934_v18  ;;  %754 = vst.msk [vmem:[#allocation3 + $0x11] sm:$0x1] %vm720_vm2, %v744_v19  ;;  %v690_v18 = vpack.c.bf16 %v3236_v54, %v3236_v54  ;;  %v2842_v19 = vld [vmem:[%s3690_s15] sm:$0x7f]  }
 0x91b   :  { %v2843_v54 = vld [vmem:[%s3690_s15 + $0x4] sm:$0xfc]  }
 0x91d   :  { %v760_v20 = vpop.permute.xlu1 %759  ;;  %v776_v21 = vpop.permute.xlu0 %775 }
 0x91e   :  { %770 = vst.msk [vmem:[#allocation3 + $0x12] sm:$0x1] %vm720_vm2, %v760_v20  ;;  %786 = vst.msk [vmem:[#allocation3 + $0x13] sm:$0x1] %vm720_vm2, %v776_v21  ;;  %v2929_v20 = vmov 65535  }
 0x91f   :  { %v1271_v21 = vsel %vm1269_vm6, 4294967295, %v2929_v20 }
 0x921   :  { %v792_v22 = vpop.permute.xlu1 %791  ;;  %v808_v23 = vpop.permute.xlu0 %807  ;;  %v950_v25 = vld [vmem:[#allocation3 + $0x8] sm:$0x3f] }
 0x922   :  { %802 = vst.msk [vmem:[#allocation3 + $0x14] sm:$0x1] %vm720_vm2, %v792_v22  ;;  %818 = vst.msk [vmem:[#allocation3 + $0x15] sm:$0x1] %vm720_vm2, %v808_v23  ;;  %v957_v26 = vpack.c.bf16 %v950_v25, %v949_v24  ;;  %v1272_v23 = vsel %vm1270_vm7, %v1271_v21, 0  ;;  %v1355_v25 = vshrl.u32 %v2843_v54, 16 }
 0x923   :  { %v2844_v22 = vld [vmem:[%s3690_s15 + $0xc] ss:$0 sps:$4 sm:$0x11]   ;;  %v1274_v24 = vand.u32 %v2842_v19, %v1272_v23  ;;  %vm1538_vm7 = vcmask 80896  }
 0x924   :  { %v963_v27 = vsel %vm961_vm4, %v957_v26, 0 }
 0x925   :  { %2619 = vmatpush3.bf16.xpose.msra.mxu1 %v963_v27  ;;  %v824_v28 = vpop.permute.xlu1 %823  ;;  %v840_v29 = vpop.permute.xlu0 %839  ;;  %v1363_v27 = vshll.u32 %v2844_v22, 16 }
 0x926   :  { %834 = vst.msk [vmem:[#allocation3 + $0x16] sm:$0x1] %vm720_vm2, %v824_v28  ;;  %850 = vst.msk [vmem:[#allocation3 + $0x17] sm:$0x1] %vm720_vm2, %v840_v29  ;;  %2624 = vmatprep.subr.bf16.mxu1 %v2909_v2  ;;  %v1357_v28 = vrot.slane %v1355_v25, 2 }
 0x929   :  { %v856_v30 = vpop.permute.xlu1 %855  ;;  %v872_v31 = vpop.permute.xlu0 %871 }
 0x92a   :  { %866 = vst.msk [vmem:[#allocation3 + $0x18] sm:$0x1] %vm720_vm2, %v856_v30  ;;  %882 = vst.msk [vmem:[#allocation3 + $0x19] sm:$0x1] %vm720_vm2, %v872_v31  ;;  %v1365_v30 = vrot.slane %v1363_v27, 3 }
 0x92c   :  { %2621 = vmatmul.mubr.msk.bf16.vlgmr.msra.gmra.mrb[16].mxu1 %vm961_vm4, %v957_v26  ;;  %v1358_v26 = vshll.u32 %v2843_v54, 16 }
 0x92d   :  { %v888_v32 = vpop.permute.xlu1 %887  ;;  %v904_v0 = vpop.permute.xlu0 %903  ;;  %2626 = vmatprep.mubr.msk.bf16.mxu1 %vm2910_vm0, %v2909_v2  ;;  %v951_v38 = vld [vmem:[#allocation3 + $0x10] sm:$0xff] }
 0x92e   :  { %898 = vst.msk [vmem:[#allocation3 + $0x1a] sm:$0x1] %vm720_vm2, %v888_v32  ;;  %914 = vst.msk [vmem:[#allocation3 + $0x1b] sm:$0x1] %vm720_vm2, %v904_v0  ;;  %v1360_v29 = vrot.slane %v1358_v26, 3 }
 0x930   :  { %v1361_v31 = vor.u32 %v1360_v29, %v1357_v28 }
 0x931   :  { %v920_v1 = vpop.permute.xlu1 %919  ;;  %v936_v33 = vpop.permute.xlu0 %935 }
 0x932   :  { %930 = vst.msk [vmem:[#allocation3 + $0x1c] sm:$0x1] %vm720_vm2, %v920_v1  ;;  %946 = vst.msk [vmem:[#allocation3 + $0x1d] sm:$0x1] %vm720_vm2, %v936_v33  ;;  %v1366_v32 = vsel %vm1353_vm8, %v1361_v31, %v1365_v30  ;;  %vm1619_vm8 = vcmask 72704  }
 0x933   :  { %v1372_v1 = vsel %vm1269_vm6, %v1366_v32, 0 }
 0x934   :  { %2661 = vmatpush3.bf16.msra.mxu0 %v1372_v1 }
 0x935   :  { %v746_v34 = vpop.permute.xlu1 %745  ;;  %v762_v35 = vpop.permute.xlu0 %761  ;;  %2666 = vmatprep.subr.bf16.mxu0 %v2909_v2 }
 0x936   :  { %755 = vst.msk [vmem:[#allocation3 + $0x21] sm:$0x1] %vm720_vm2, %v746_v34  ;;  %771 = vst.msk [vmem:[#allocation3 + $0x22] sm:$0x1] %vm720_vm2, %v762_v35 }
 0x939   :  { %v778_v36 = vpop.permute.xlu1 %777  ;;  %v794_v37 = vpop.permute.xlu0 %793  ;;  %v952_v57 = vld [vmem:[#allocation3 + $0x18] sm:$0x3f] }
 0x93a   :  { %787 = vst.msk [vmem:[#allocation3 + $0x23] sm:$0x1] %vm720_vm2, %v778_v36  ;;  %803 = vst.msk [vmem:[#allocation3 + $0x24] sm:$0x1] %vm720_vm2, %v794_v37  ;;  %v958_v39 = vpack.c.bf16 %v952_v57, %v951_v38 }
 0x93c   :  { %v1007_v40 = vsel %vm961_vm4, %v958_v39, 0 }
 0x93d   :  { %v810_v12 = vpop.permute.xlu1 %809  ;;  %v826_v13 = vpop.permute.xlu0 %825  ;;  %2625 = vmatpush3.bf16.xpose.msra.mxu1 %v1007_v40 }
 0x93e   :  { %819 = vst.msk [vmem:[#allocation3 + $0x25] sm:$0x1] %vm720_vm2, %v810_v12  ;;  %835 = vst.msk [vmem:[#allocation3 + $0x26] sm:$0x1] %vm720_vm2, %v826_v13  ;;  %2630 = vmatprep.subr.bf16.mxu1 %v2909_v2 }
 0x941   :  { %v842_v41 = vpop.permute.xlu1 %841  ;;  %v858_v42 = vpop.permute.xlu0 %857 }
 0x942   :  { %851 = vst.msk [vmem:[#allocation3 + $0x27] sm:$0x1] %vm720_vm2, %v842_v41  ;;  %867 = vst.msk [vmem:[#allocation3 + $0x28] sm:$0x1] %vm720_vm2, %v858_v42 }
 0x944   :  { %2627 = vmatmul.mubr.msk.bf16.vlgmr.msra.gmra.mrb[20].mxu1 %vm961_vm4, %v958_v39 }
 0x945   :  { %v874_v43 = vpop.permute.xlu1 %873  ;;  %v890_v44 = vpop.permute.xlu0 %889  ;;  %2632 = vmatprep.mubr.msk.bf16.mxu1 %vm2910_vm0, %v2909_v2 }
 0x946   :  { %883 = vst.msk [vmem:[#allocation3 + $0x29] sm:$0x1] %vm720_vm2, %v874_v43  ;;  %899 = vst.msk [vmem:[#allocation3 + $0x2a] sm:$0x1] %vm720_vm2, %v890_v44 }
 0x949   :  { %v906_v45 = vpop.permute.xlu1 %905  ;;  %v922_v46 = vpop.permute.xlu0 %921  ;;  %v953_v56 = vld [vmem:[#allocation3 + $0x20] sm:$0xff] }
 0x94a   :  { %915 = vst.msk [vmem:[#allocation3 + $0x2b] sm:$0x1] %vm720_vm2, %v906_v45  ;;  %931 = vst.msk [vmem:[#allocation3 + $0x2c] sm:$0x1] %vm720_vm2, %v922_v46 }
 0x94d   :  { %v938_v47 = vpop.permute.xlu1 %937  ;;  %v748_v49 = vpop.permute.xlu0 %747 }
 0x94e   :  { %947 = vst.msk [vmem:[#allocation3 + $0x2d] sm:$0x1] %vm720_vm2, %v938_v47  ;;  %756 = vst.msk [vmem:[#allocation3 + $0x31] sm:$0x1] %vm720_vm2, %v748_v49 }
 0x951   :  { %v764_v51 = vpop.permute.xlu1 %763  ;;  %v780_v52 = vpop.permute.xlu0 %779 }
 0x952   :  { %772 = vst.msk [vmem:[#allocation3 + $0x32] sm:$0x1] %vm720_vm2, %v764_v51  ;;  %788 = vst.msk [vmem:[#allocation3 + $0x33] sm:$0x1] %vm720_vm2, %v780_v52 }
 0x955   :  { %v796_v53 = vpop.permute.xlu1 %795  ;;  %v812_v55 = vpop.permute.xlu0 %811  ;;  %v954_v58 = vld [vmem:[#allocation3 + $0x28] sm:$0x3f] }
 0x956   :  { %804 = vst.msk [vmem:[#allocation3 + $0x34] sm:$0x1] %vm720_vm2, %v796_v53  ;;  %820 = vst.msk [vmem:[#allocation3 + $0x35] sm:$0x1] %vm720_vm2, %v812_v55  ;;  %v959_v59 = vpack.c.bf16 %v954_v58, %v953_v56 }
 0x958   :  { %v1051_v60 = vsel %vm961_vm4, %v959_v59, 0 }
 0x959   :  { %2631 = vmatpush3.bf16.xpose.msra.mxu1 %v1051_v60  ;;  %v828_v61 = vpop.permute.xlu1 %827  ;;  %v844_v62 = vpop.permute.xlu0 %843 }
 0x95a   :  { %836 = vst.msk [vmem:[#allocation3 + $0x36] sm:$0x1] %vm720_vm2, %v828_v61  ;;  %852 = vst.msk [vmem:[#allocation3 + $0x37] sm:$0x1] %vm720_vm2, %v844_v62  ;;  %2636 = vmatprep.subr.bf16.mxu1 %v2909_v2 }
 0x95d   :  { %v860_v48 = vpop.permute.xlu1 %859  ;;  %v876_v63 = vpop.permute.xlu0 %875 }
 0x95e   :  { %868 = vst.msk [vmem:[#allocation3 + $0x38] sm:$0x1] %vm720_vm2, %v860_v48  ;;  %884 = vst.msk [vmem:[#allocation3 + $0x39] sm:$0x1] %vm720_vm2, %v876_v63 }
 0x960   :  { %2633 = vmatmul.mubr.msk.bf16.vlgmr.msra.gmra.mrb[24].mxu1 %vm961_vm4, %v959_v59 }
 0x961   :  { %v892_v3 = vpop.permute.xlu1 %891  ;;  %v908_v50 = vpop.permute.xlu0 %907  ;;  %2638 = vmatprep.mubr.msk.bf16.mxu1 %vm2910_vm0, %v2909_v2  ;;  %v955_v5 = vld [vmem:[#allocation3 + $0x30] sm:$0xff] }
 0x962   :  { %900 = vst.msk [vmem:[#allocation3 + $0x3a] sm:$0x1] %vm720_vm2, %v892_v3  ;;  %916 = vst.msk [vmem:[#allocation3 + $0x3b] sm:$0x1] %vm720_vm2, %v908_v50 }
 0x965   :  { %v924_v4 = vpop.permute.xlu1 %923  ;;  %v940_v6 = vpop.permute.xlu0 %939 }
 0x966   :  { %932 = vst.msk [vmem:[#allocation3 + $0x3c] sm:$0x1] %vm720_vm2, %v924_v4  ;;  %948 = vst.msk [vmem:[#allocation3 + $0x3d] sm:$0x1] %vm720_vm2, %v940_v6  ;;  %vm1367_vm2 = vcmask 97280  }
 0x96d   :  { %v956_v8 = vld [vmem:[#allocation3 + $0x38] sm:$0x3f] }
 0x96e   :  { %v960_v9 = vpack.c.bf16 %v956_v8, %v955_v5 }
 0x970   :  { %v1095_v10 = vsel %vm961_vm4, %v960_v9, 0 }
 0x971   :  { %2637 = vmatpush3.bf16.xpose.msra.mxu1 %v1095_v10 }
 0x972   :  { %2642 = vmatprep.subr.bf16.mxu1 %v2909_v2 }
 0x978   :  { %2639 = vmatmul.mubr.msk.bf16.vlgmr.msra.gmra.mrb[28].mxu1 %vm961_vm4, %v960_v9 }
 0x979   :  { %2643 = vmatpush3.bf16.msra.mxu1 %v2838_v11  ;;  %2650 = vmatprep.mubr.msk.bf16.mxu1 %vm2910_vm0, %v2909_v2 }
 0x97a   :  { %2644 = vmatprep.subr.bf16.mxu1 %v2909_v2 }
 0x97d   :  { %2645 = vmatpush3.bf16.msra.mxu1 %v2839_v14 }
 0x97e   :  { %2646 = vmatprep.subr.bf16.mxu1 %v2909_v2 }
 0x981   :  { %2647 = vmatpush3.bf16.msra.mxu1 %v2840_v15 }
 0x982   :  { %2648 = vmatprep.subr.bf16.mxu1 %v2909_v2 }
 0x985   :  { %2649 = vmatpush3.bf16.msra.mxu1 %v1188_v17 }
 0x986   :  { %2654 = vmatprep.subr.bf16.mxu1 %v2909_v2 }
 0x988   :  { %2651 = vmatmul.mubr.msk.bf16.vlgmr.msra.gmra.mrb[32].mxu1 %vm1183_vm5, %v690_v18  ;;  %vm1454_vm5 = vcmask 89088  }
 0x989   :  { %2656 = vmatprep.mubr.msk.bf16.mxu1 %vm2910_vm0, %v2909_v2  ;;  %2655 = vmatpush3.bf16.msra.mxu1 %v1274_v24 }
 0x98a   :  { %2732 = vmatprep.subr.bf16.mxu1 %v2909_v2 }
 0x9ff   :  { %v999_v0 = vpop.f32.mrb[16].mxu1 }
 0xa00   :  { %1139 = vst.msk [vmem:[#allocation4] sm:$0xff] %vm1138_vm9, %v999_v0  ;;  %v2622_v33 = vpop.f32.mrb[17].mxu1 }
 0xa01   :  { %v1002_v34 = vpop.f32.mrb[18].mxu1 }
 0xa02   :  { %1141 = vst.msk [vmem:[#allocation4 + $0x8] sm:$0x3f] %vm1140_vm10, %v1002_v34  ;;  %v2623_v35 = vpop.f32.mrb[19].mxu1 }
 0xa07   :  { %v1415_v41 = vld [vmem:[#allocation4 + $0x2] sm:$0x1]  ;;  %v1317_v42 = vld [vmem:[#allocation4 + $0x1] sm:$0x1]  ;;  %v1586_v43 = vld [vmem:[#allocation4 + $0x4] sm:$0x1] }
 0xa08   :  { %v1505_v44 = vld [vmem:[#allocation4 + $0x3] sm:$0x1]  ;;  %v1757_v47 = vld [vmem:[#allocation4 + $0x6] sm:$0x1]  ;;  %v1419_v49 = vpack.c.bf16 %v1415_v41, %v1415_v41  ;;  %v1321_v51 = vpack.c.bf16 %v1317_v42, %v1317_v42  ;;  %v1590_v53 = vpack.c.bf16 %v1586_v43, %v1586_v43  ;;  %v1669_v55 = vld [vmem:[#allocation4 + $0x5] sm:$0x1] }
 0xa09   :  { %v1509_v56 = vpack.c.bf16 %v1505_v44, %v1505_v44  ;;  %v1848_v58 = vld [vmem:[#allocation4 + $0x7] sm:$0x1]  ;;  %v1761_v48 = vpack.c.bf16 %v1757_v47, %v1757_v47  ;;  %v1929_v63 = vld [vmem:[#allocation4 + $0x8] sm:$0x1]  ;;  %v1673_v4 = vpack.c.bf16 %v1669_v55, %v1669_v55  ;;  %v2013_v10 = vld [vmem:[#allocation4 + $0x9] sm:$0x1] }
 0xa0a   :  { %v1429_v6 = vunpack.c.l.b16 %v1419_v49  ;;  %v1332_v5 = vunpack.c.l.b16 %v1321_v51  ;;  %v3412_v8 = vunpack.c.l.b16 %v1590_v53  ;;  %v1852_v9 = vpack.c.bf16 %v1848_v58, %v1848_v58  ;;  %v2096_v11 = vld [vmem:[#allocation4 + $0xa] sm:$0x1]  ;;  %v2184_v14 = vld [vmem:[#allocation4 + $0xb] sm:$0x1]  ;;  %v1230_v21 = vld [vmem:[#allocation4] sm:$0x1] }
 0xa0b   :  { %v3414_v16 = vunpack.c.l.b16 %v1509_v56  ;;  %v1933_v19 = vpack.c.bf16 %v1929_v63, %v1929_v63  ;;  %v1771_v23 = vunpack.c.l.b16 %v1761_v48  ;;  %v2017_v27 = vpack.c.bf16 %v2013_v10, %v2013_v10  ;;  %v3416_v30 = vld [vmem:[#allocation4 + $0xc] sm:$0x1] }
 0xa0c   :  { %v2100_v28 = vpack.c.bf16 %v2096_v11, %v2096_v11  ;;  %v2188_v29 = vpack.c.bf16 %v2184_v14, %v2184_v14  ;;  %v3418_v31 = vunpack.c.l.b16 %v1673_v4  ;;  %v3420_v0 = vunpack.c.l.b16 %v1852_v9 }
 0xa0d   :  { %v1234_v1 = vpack.c.bf16 %v1230_v21, %v1230_v21  ;;  %v3428_v43 = vunpack.c.l.b16 %v2017_v27 }
 0xa0f   :  { %v3434_v56 = vunpack.c.l.b16 %v1234_v1 }
 0xa17   :  { %v1043_v36 = vpop.f32.mrb[20].mxu1 }
 0xa18   :  { %1142 = vst.msk [vmem:[#allocation4 + $0x10] sm:$0xff] %vm1138_vm9, %v1043_v36  ;;  %v2628_v37 = vpop.f32.mrb[21].mxu1 }
 0xa19   :  { %v1046_v38 = vpop.f32.mrb[22].mxu1 }
 0xa1a   :  { %1143 = vst.msk [vmem:[#allocation4 + $0x18] sm:$0x3f] %vm1140_vm10, %v1046_v38  ;;  %v2629_v57 = vpop.f32.mrb[23].mxu1  ;;  %v3422_v38 = vunpack.c.l.b16 %v1933_v19 }
 0xa1f   :  { %v1416_v45 = vld [vmem:[#allocation4 + $0x12] sm:$0x1]  ;;  %v1318_v46 = vld [vmem:[#allocation4 + $0x11] sm:$0x1]  ;;  %v1587_v52 = vld [vmem:[#allocation4 + $0x14] sm:$0x1] }
 0xa20   :  { %v1420_v59 = vpack.c.bf16 %v1416_v45, %v1416_v45  ;;  %v1322_v60 = vpack.c.bf16 %v1318_v46, %v1318_v46  ;;  %v1506_v61 = vld [vmem:[#allocation4 + $0x13] sm:$0x1]  ;;  %v1758_v62 = vld [vmem:[#allocation4 + $0x16] sm:$0x1]  ;;  %v1591_v3 = vpack.c.bf16 %v1587_v52, %v1587_v52  ;;  %v1670_v50 = vld [vmem:[#allocation4 + $0x15] sm:$0x1]  ;;  %v3430_v45 = vunpack.c.l.b16 %v2100_v28 }
 0xa21   :  { %v1510_v15 = vpack.c.bf16 %v1506_v61, %v1506_v61  ;;  %v1762_v17 = vpack.c.bf16 %v1758_v62, %v1758_v62  ;;  %v1849_v18 = vld [vmem:[#allocation4 + $0x17] sm:$0x1]  ;;  %v1674_v24 = vpack.c.bf16 %v1670_v50, %v1670_v50  ;;  %v1930_v25 = vld [vmem:[#allocation4 + $0x18] sm:$0x1]  ;;  %v2014_v42 = vld [vmem:[#allocation4 + $0x19] sm:$0x1]  ;;  %v3432_v46 = vunpack.c.l.b16 %v2188_v29 }
 0xa22   :  { %v1430_v54 = vunpack.c.l.b16 %v1420_v59  ;;  %v1333_v22 = vunpack.c.l.b16 %v1322_v60  ;;  %v1601_v26 = vunpack.c.l.b16 %v1591_v3  ;;  %v1853_v32 = vpack.c.bf16 %v1849_v18, %v1849_v18  ;;  %v2097_v44 = vld [vmem:[#allocation4 + $0x1a] sm:$0x1]  ;;  %v2185_v14 = vld [vmem:[#allocation4 + $0x1b] sm:$0x1]  ;;  %v2259_v27 = vld [vmem:[#allocation4 + $0x1c] sm:$0x1] }
 0xa23   :  { %v1520_v35 = vunpack.c.l.b16 %v1510_v15  ;;  %v1772_v36 = vunpack.c.l.b16 %v1762_v17  ;;  %v1934_v37 = vpack.c.bf16 %v1930_v25, %v1930_v25  ;;  %v2018_v3 = vpack.c.bf16 %v2014_v42, %v2014_v42  ;;  %v1231_v15 = vld [vmem:[#allocation4 + $0x10] sm:$0x1] }
 0xa24   :  { %v1433_v57 = vrot.slane %v1430_v54, 7  ;;  %v1604_v41 = vrot.slane %v1601_v26, 7  ;;  %v1863_v55 = vunpack.c.l.b16 %v1853_v32  ;;  %v2101_v11 = vpack.c.bf16 %v2097_v44, %v2097_v44 }
 0xa25   :  { %v1523_v59 = vrot.slane %v1520_v35, 7  ;;  %v1775_v60 = vrot.slane %v1772_v36, 7  ;;  %v1944_v61 = vunpack.c.l.b16 %v1934_v37  ;;  %v3449_v32 = vunpack.c.l.b16 %v2018_v3 }
 0xa26   :  { %v1434_v62 = vsel %vm1249_vm11, %v1433_v57, %v1429_v6  ;;  %v1605_v21 = vsel %vm1249_vm11, %v1604_v41, %v3412_v8  ;;  %v1866_v54 = vrot.slane %v1863_v55, 7  ;;  %v2189_v8 = vpack.c.bf16 %v2185_v14, %v2185_v14 }
 0xa27   :  { %v1947_v26 = vrot.slane %v1944_v61, 7  ;;  %v1235_v1 = vpack.c.bf16 %v1231_v15, %v1231_v15  ;;  %v3456_v36 = vunpack.c.l.b16 %v2101_v11 }
 0xa28   :  { %v3464_v41 = vsel %vm1249_vm11, %v1866_v54, %v3420_v0 }
 0xa29   :  { %v3468_v42 = vsel %vm1249_vm11, %v1947_v26, %v3422_v38  ;;  %v2113_v0 = vrot.slane %v3456_v36, 7 }
 0xa33   :  { %v1087_v39 = vpop.f32.mrb[24].mxu1 }
 0xa34   :  { %1144 = vst.msk [vmem:[#allocation4 + $0x20] sm:$0xff] %vm1138_vm9, %v1087_v39  ;;  %v2634_v40 = vpop.f32.mrb[25].mxu1  ;;  %v1336_v39 = vrot.slane %v1333_v22, 7  ;;  %v3444_v22 = vsel %vm1249_vm11, %v1523_v59, %v3414_v16 }
 0xa35   :  { %v1090_v12 = vpop.f32.mrb[26].mxu1 }
 0xa36   :  { %1145 = vst.msk [vmem:[#allocation4 + $0x28] sm:$0x3f] %vm1140_vm10, %v1090_v12  ;;  %v2635_v13 = vpop.f32.mrb[27].mxu1  ;;  %v3424_v12 = vunpack.c.l.b16 %v1674_v24  ;;  %v1337_v48 = vsel %vm1249_vm11, %v1336_v39, %v1332_v5  ;;  %v3447_v24 = vsel %vm1249_vm11, %v1775_v60, %v1771_v23  ;;  %v2263_v39 = vpack.c.bf16 %v2259_v27, %v2259_v27 }
 0xa37   :  { %v2262_v13 = vpack.c.bf16 %v3416_v30, %v3416_v30  ;;  %v2845_v30 = vld [vmem:[%s3690_s15 + $0xc] sm:$0x3f]  }
 0xa38   :  { %v1687_v63 = vrot.slane %v3424_v12, 7 }
 0xa3a   :  { %v3460_v12 = vsel %vm1249_vm11, %v1687_v63, %v3418_v31  ;;  %v3484_v63 = vunpack.c.l.b16 %v2263_v39 }
 0xa3b   :  { %v1417_v33 = vld [vmem:[#allocation4 + $0x22] sm:$0x1]  ;;  %v1319_v34 = vld [vmem:[#allocation4 + $0x21] sm:$0x1]  ;;  %v1588_v40 = vld [vmem:[#allocation4 + $0x24] sm:$0x1] }
 0xa3c   :  { %v1421_v47 = vpack.c.bf16 %v1417_v33, %v1417_v33  ;;  %v1323_v49 = vpack.c.bf16 %v1319_v34, %v1319_v34  ;;  %v1507_v51 = vld [vmem:[#allocation4 + $0x23] sm:$0x1]  ;;  %v1759_v52 = vld [vmem:[#allocation4 + $0x26] sm:$0x1]  ;;  %v1671_v53 = vld [vmem:[#allocation4 + $0x25] sm:$0x1]  ;;  %v1592_v58 = vpack.c.bf16 %v1588_v40, %v1588_v40 }
 0xa3d   :  { %v1511_v50 = vpack.c.bf16 %v1507_v51, %v1507_v51  ;;  %v1763_v4 = vpack.c.bf16 %v1759_v52, %v1759_v52  ;;  %v1675_v9 = vpack.c.bf16 %v1671_v53, %v1671_v53  ;;  %v1850_v10 = vld [vmem:[#allocation4 + $0x27] sm:$0x1]  ;;  %v1931_v25 = vld [vmem:[#allocation4 + $0x28] sm:$0x1]  ;;  %v3475_v51 = vunpack.c.l.b16 %v1235_v1  ;;  %v2015_v26 = vld [vmem:[#allocation4 + $0x29] sm:$0x1] }
 0xa3e   :  { %v1431_v18 = vunpack.c.l.b16 %v1421_v47  ;;  %v1334_v19 = vunpack.c.l.b16 %v1323_v49  ;;  %v1602_v5 = vunpack.c.l.b16 %v1592_v58  ;;  %v1854_v29 = vpack.c.bf16 %v1850_v10, %v1850_v10  ;;  %v2098_v27 = vld [vmem:[#allocation4 + $0x2a] sm:$0x1] }
 0xa3f   :  { %v1521_v34 = vunpack.c.l.b16 %v1511_v50  ;;  %v3452_v35 = vunpack.c.l.b16 %v1763_v4  ;;  %v3454_v16 = vunpack.c.l.b16 %v1675_v9  ;;  %v1935_v57 = vpack.c.bf16 %v1931_v25, %v1931_v25 }
 0xa40   :  { %v1435_v23 = vrot.slane %v1431_v18, 6  ;;  %v1338_v37 = vrot.slane %v1334_v19, 6  ;;  %v1606_v40 = vrot.slane %v1602_v5, 6  ;;  %v3470_v44 = vunpack.c.l.b16 %v1854_v29 }
 0xa41   :  { %v2030_v47 = vrot.slane %v3449_v32, 7  ;;  %v3473_v49 = vunpack.c.l.b16 %v2189_v8  ;;  %v1525_v52 = vrot.slane %v1521_v34, 6  ;;  %v1777_v31 = vrot.slane %v3452_v35, 6 }
 0xa42   :  { %v1689_v53 = vrot.slane %v3454_v16, 6  ;;  %v1436_v58 = vsel %vm1252_vm13, %v1435_v23, %v1434_v62  ;;  %v1339_v59 = vsel %vm1252_vm13, %v1338_v37, %v1337_v48  ;;  %v3482_v61 = vunpack.c.l.b16 %v1935_v57 }
 0xa43   :  { %v1607_v9 = vsel %vm1252_vm13, %v1606_v40, %v1605_v21  ;;  %v1868_v19 = vrot.slane %v3470_v44, 6  ;;  %v1526_v35 = vsel %vm1252_vm13, %v1525_v52, %v3444_v22  ;;  %v2019_v37 = vpack.c.bf16 %v2015_v26, %v2015_v26 }
 0xa44   :  { %v2102_v57 = vpack.c.bf16 %v2098_v27, %v2098_v27  ;;  %v1778_v52 = vsel %vm1252_vm13, %v1777_v31, %v3447_v24  ;;  %v2260_v24 = vld [vmem:[#allocation4 + $0x2c] sm:$0x1] }
 0xa4b   :  { %v1131_v17 = vpop.f32.mrb[28].mxu1 }
 0xa4c   :  { %1146 = vst.msk [vmem:[#allocation4 + $0x30] sm:$0xff] %vm1138_vm9, %v1131_v17  ;;  %v2640_v6 = vpop.f32.mrb[29].mxu1  ;;  %vm1801_vm9 = vcmask 1042432  }
 0xa4d   :  { %v1134_v28 = vpop.f32.mrb[30].mxu1 }
 0xa4e   :  { %1147 = vst.msk [vmem:[#allocation4 + $0x38] sm:$0x3f] %vm1140_vm10, %v1134_v28  ;;  %v2641_v33 = vpop.f32.mrb[31].mxu1  ;;  %vm1709_vm10 = vcmask 64512  }
 0xa53   :  { %v1418_v55 = vld [vmem:[#allocation4 + $0x32] sm:$0x1]  ;;  %v1320_v38 = vld [vmem:[#allocation4 + $0x31] sm:$0x1]  ;;  %v1589_v60 = vld [vmem:[#allocation4 + $0x34] sm:$0x1] }
 0xa54   :  { %v1422_v3 = vpack.c.bf16 %v1418_v55, %v1418_v55  ;;  %v1324_v50 = vpack.c.bf16 %v1320_v38, %v1320_v38  ;;  %v1593_v4 = vpack.c.bf16 %v1589_v60, %v1589_v60  ;;  %v1508_v10 = vld [vmem:[#allocation4 + $0x33] sm:$0x1]  ;;  %v1760_v11 = vld [vmem:[#allocation4 + $0x36] sm:$0x1]  ;;  %v1672_v14 = vld [vmem:[#allocation4 + $0x35] sm:$0x1] }
 0xa55   :  { %v1512_v15 = vpack.c.bf16 %v1508_v10, %v1508_v10  ;;  %v1764_v17 = vpack.c.bf16 %v1760_v11, %v1760_v11  ;;  %v1676_v18 = vpack.c.bf16 %v1672_v14, %v1672_v14  ;;  %v1851_v62 = vld [vmem:[#allocation4 + $0x37] sm:$0x1]  ;;  %v1932_v48 = vld [vmem:[#allocation4 + $0x38] sm:$0x1]  ;;  %v2186_v60 = vld [vmem:[#allocation4 + $0x2b] sm:$0x1] }
 0xa56   :  { %v1432_v54 = vunpack.c.l.b16 %v1422_v3  ;;  %v1335_v6 = vunpack.c.l.b16 %v1324_v50  ;;  %v1603_v5 = vunpack.c.l.b16 %v1593_v4  ;;  %v1855_v25 = vpack.c.bf16 %v1851_v62, %v1851_v62  ;;  %v1232_v3 = vld [vmem:[#allocation4 + $0x20] sm:$0x1]  ;;  %v2016_v14 = vld [vmem:[#allocation4 + $0x39] sm:$0x1] }
 0xa57   :  { %v1522_v28 = vunpack.c.l.b16 %v1512_v15  ;;  %v1774_v29 = vunpack.c.l.b16 %v1764_v17  ;;  %v1686_v8 = vunpack.c.l.b16 %v1676_v18  ;;  %v1936_v21 = vpack.c.bf16 %v1932_v48, %v1932_v48  ;;  %v2099_v15 = vld [vmem:[#allocation4 + $0x3a] sm:$0x1]  ;;  %v1233_v48 = vld [vmem:[#allocation4 + $0x30] sm:$0x1] }
 0xa58   :  { %v1437_v1 = vrot.slane %v1432_v54, 5  ;;  %v1340_v33 = vrot.slane %v1335_v6, 5  ;;  %v1608_v34 = vrot.slane %v1603_v5, 5  ;;  %v1865_v23 = vunpack.c.l.b16 %v1855_v25 }
 0xa59   :  { %v1527_v16 = vrot.slane %v1522_v28, 5  ;;  %v1779_v55 = vrot.slane %v1774_v29, 5  ;;  %v1691_v38 = vrot.slane %v1686_v8, 5  ;;  %v1946_v11 = vunpack.c.l.b16 %v1936_v21  ;;  %v2261_v21 = vld [vmem:[#allocation4 + $0x3c] sm:$0x1] }
 0xa5a   :  { %v1438_v39 = vsel %vm1255_vm14, %v1437_v1, %v1436_v58  ;;  %v1341_v40 = vsel %vm1255_vm14, %v1340_v33, %v1339_v59  ;;  %v1609_v10 = vsel %vm1255_vm14, %v1608_v34, %v1607_v9  ;;  %v1690_v58 = vsel %vm1252_vm13, %v1689_v53, %v3460_v12  ;;  %v2187_v9 = vld [vmem:[#allocation4 + $0x3b] sm:$0x1] }
 0xa5b   :  { %v1439_v50 = vpack.c.b16 %v1438_v39, %v1438_v39  ;;  %v1342_v4 = vpack.c.b16 %v1341_v40, %v1341_v40  ;;  %v1528_v22 = vsel %vm1255_vm14, %v1527_v16, %v1526_v35  ;;  %v1949_v59 = vrot.slane %v3482_v61, 6 }
 0xa5c   :  { %v2028_v17 = vunpack.c.l.b16 %v2019_v37  ;;  %v2111_v18 = vunpack.c.l.b16 %v2102_v57  ;;  %v2190_v62 = vpack.c.bf16 %v2186_v60, %v2186_v60  ;;  %v1236_v54 = vpack.c.bf16 %v1232_v3, %v1232_v3 }
 0xa5d   :  { %1440 = vrot.lane.b32.xlu0 %v1439_v50, %s2930_s8  ;;  %1343 = vrot.lane.b32.xlu1 %v1342_v4, %s2931_s2  ;;  %v1610_v6 = vpack.c.b16 %v1609_v10, %v1609_v10  ;;  %v1870_v5 = vrot.slane %v1865_v23, 5  ;;  %v2020_v25 = vpack.c.bf16 %v2016_v14, %v2016_v14  ;;  %v2103_v26 = vpack.c.bf16 %v2099_v15, %v2099_v15 }
 0xa5e   :  { %v1529_v31 = vpack.c.b16 %v1528_v22, %v1528_v22  ;;  %v1780_v12 = vsel %vm1255_vm14, %v1779_v55, %v1778_v52  ;;  %v1692_v53 = vsel %vm1255_vm14, %v1691_v38, %v1690_v58  ;;  %v1951_v61 = vrot.slane %v1946_v11, 5 }
 0xa5f   :  { %v2029_v27 = vunpack.c.l.b16 %v2020_v25  ;;  %v2112_v28 = vunpack.c.l.b16 %v2103_v26  ;;  %v2191_v29 = vpack.c.bf16 %v2187_v9, %v2187_v9  ;;  %v1237_v8 = vpack.c.bf16 %v1233_v48, %v1233_v48 }
 0xa60   :  { %v1869_v1 = vsel %vm1252_vm13, %v1868_v19, %v3464_v41  ;;  %v1950_v33 = vsel %vm1252_vm13, %v1949_v59, %v3468_v42  ;;  %v2199_v34 = vunpack.c.l.b16 %v2190_v62  ;;  %v2264_v35 = vpack.c.bf16 %v2260_v24, %v2260_v24 }
 0xa61   :  { %1611 = vrot.lane.b32.xlu0 %v1610_v6, %s2932_s13  ;;  %1530 = vrot.lane.b32.xlu1 %v1529_v31, %s2914_s1  ;;  %v1871_v16 = vsel %vm1255_vm14, %v1870_v5, %v1869_v1  ;;  %v2032_v23 = vrot.slane %v2028_v17, 6  ;;  %v2115_v37 = vrot.slane %v2111_v18, 6  ;;  %v1246_v57 = vunpack.c.l.b16 %v1236_v54  ;;  %s2933_s1 = smov 121  }
 0xa62   :  { %v1781_v39 = vpack.c.b16 %v1780_v12, %v1780_v12  ;;  %v1693_v40 = vpack.c.b16 %v1692_v53, %v1692_v53  ;;  %v1952_v55 = vsel %vm1255_vm14, %v1951_v61, %v1950_v33  ;;  %v2265_v38 = vpack.c.bf16 %v2261_v21, %v2261_v21  ;;  %v2846_v21 = vld [vmem:[%s3690_s15 + $0x10] sm:$0x7c]  }
 0xa63   :  { %v2034_v60 = vrot.slane %v2029_v27, 5  ;;  %v2117_v3 = vrot.slane %v2112_v28, 5  ;;  %v2200_v44 = vunpack.c.l.b16 %v2191_v29  ;;  %v1247_v50 = vunpack.c.l.b16 %v1237_v8 }
 0xa64   :  { %v2031_v41 = vsel %vm1249_vm11, %v2030_v47, %v3428_v43  ;;  %v2114_v42 = vsel %vm1249_vm11, %v2113_v0, %v3430_v45  ;;  %v2201_v19 = vrot.slane %v3473_v49, 7  ;;  %v1248_v4 = vrot.slane %v3475_v51, 7 }
 0xa65   :  { %1782 = vrot.lane.b32.xlu0 %v1781_v39, %s2933_s1  ;;  %1694 = vrot.lane.b32.xlu1 %v1693_v40, %s2934_s27  ;;  %v2033_v10 = vsel %vm1252_vm13, %v2032_v23, %v2031_v41  ;;  %v2203_v11 = vrot.slane %v2199_v34, 6  ;;  %v1251_v14 = vrot.slane %v1246_v57, 6  ;;  %v2273_v15 = vunpack.c.l.b16 %v2264_v35  ;;  %v2847_v23 = vld [vmem:[%s3690_s15 + $0x14] sm:$0xf8]  }
 0xa66   :  { %v1872_v22 = vpack.c.b16 %v1871_v16, %v1871_v16  ;;  %v1953_v52 = vpack.c.b16 %v1952_v55, %v1952_v55  ;;  %v2116_v32 = vsel %vm1252_vm13, %v2115_v37, %v2114_v42  ;;  %v2274_v58 = vunpack.c.l.b16 %v2265_v38  ;;  %v2848_v55 = vld [vmem:[%s3690_s15 + $0x18] sm:$0xf8]  }
 0xa67   :  { %v2035_v43 = vsel %vm1255_vm14, %v2034_v60, %v2033_v10  ;;  %v2118_v36 = vsel %vm1255_vm14, %v2117_v3, %v2116_v32  ;;  %v2205_v47 = vrot.slane %v2200_v44, 5  ;;  %v1254_v45 = vrot.slane %v1247_v50, 5 }
 0xa68   :  { %v2202_v49 = vsel %vm1249_vm11, %v2201_v19, %v3432_v46  ;;  %v1250_v51 = vsel %vm1249_vm11, %v1248_v4, %v3434_v56  ;;  %v2275_v0 = vrot.slane %v3484_v63, 7  ;;  %v2277_v59 = vrot.slane %v2273_v15, 6  ;;  %v2849_v19 = vld [vmem:[%s3690_s15 + $0x1c] sm:$0x78]  }
 0xa69   :  { %1873 = vrot.lane.b32.xlu1 %v1872_v22, %s2915_s5  ;;  %1954 = vrot.lane.b32.xlu0 %v1953_v52, %s2935_s3  ;;  %v2036_v17 = vpack.c.b16 %v2035_v43, %v2035_v43  ;;  %v2119_v18 = vpack.c.b16 %v2118_v36, %v2118_v36  ;;  %v2204_v9 = vsel %vm1252_vm13, %v2203_v11, %v2202_v49  ;;  %v2271_v46 = vunpack.c.l.b16 %v2262_v13  ;;  %s2936_s5 = smov 118  }
 0xa6a   :  { %v1253_v62 = vsel %vm1252_vm13, %v1251_v14, %v1250_v51  ;;  %v2206_v48 = vsel %vm1255_vm14, %v2205_v47, %v2204_v9  ;;  %v2279_v6 = vrot.slane %v2274_v58, 5  ;;  %v1450_v13 = vshll.u32 %v2845_v30, 16  ;;  %v2850_v47 = vld [vmem:[%s3690_s15 + $0x20] sm:$0x38]   ;;  %v2851_v51 = vld [vmem:[%s3690_s15 + $0x24] sm:$0x1c]  }
 0xa6b   :  { %v1256_v54 = vsel %vm1255_vm14, %v1254_v45, %v1253_v62  ;;  %v2276_v56 = vsel %vm1249_vm11, %v2275_v0, %v2271_v46  ;;  %v2207_v63 = vpack.c.b16 %v2206_v48, %v2206_v48  ;;  %v1448_v31 = vshrl.u32 %v2845_v30, 16 }
 0xa6c   :  { %v1257_v5 = vpack.c.b16 %v1256_v54, %v1256_v54  ;;  %v2278_v25 = vsel %vm1252_vm13, %v2277_v59, %v2276_v56  ;;  %v1452_v12 = vrot.slane %v1450_v13, 1  ;;  %v1459_v53 = vsel %vm1458_vm15, 4294967295, %v2929_v20 }
 0xa6d   :  { %2037 = vrot.lane.b32.xlu1 %v2036_v17, %s2936_s5  ;;  %2120 = vrot.lane.b32.xlu0 %v2119_v18, %s2937_s0  ;;  %v2280_v26 = vsel %vm1255_vm14, %v2279_v6, %v2278_v25  ;;  %v1460_v27 = vsel %vm1269_vm6, %v1459_v53, 0  ;;  %v1537_v33 = vrot.slane %v2846_v21, 2  ;;  %v1623_v57 = vsel %vm152_vm3, 4294967295, %v2929_v20  ;;  %v2852_v18 = vld [vmem:[%s3690_s15 + $0x28] ss:$0 sps:$4 sm:$0x77]  }
 0xa6e   :  { %v2281_v24 = vpack.c.b16 %v2280_v26, %v2280_v26  ;;  %v1453_v61 = vor.u32 %v1452_v12, %v1448_v31  ;;  %vm1265_vm6 = vcmask 105472   ;;  %v1618_v39 = vrot.slane %v2847_v23, 3  ;;  %v2853_v6 = vld [vmem:[%s3690_s15 + $0x28] ss:$0 sps:$4 sm:$0xcc]  }
 0xa6f   :  { %v1543_v35 = vsel %vm1458_vm15, %v1537_v33, 0  ;;  %v1624_v40 = vsel %vm1458_vm15, %v1623_v57, 0  ;;  %v1702_v3 = vshrl.u32 %v2848_v55, 16  ;;  %v1705_v44 = vshll.u32 %v2848_v55, 16  ;;  %v2855_v33 = vld [vmem:[%s3692_s17] sm:$0xff]  }
 0xa70   :  { %v1462_v28 = vand.u32 %v1460_v27, %v1453_v61  ;;  %v1626_v60 = vand.u32 %v1624_v40, %v1618_v39  ;;  %v1790_v10 = vshrl.u32 %v2849_v19, 16  ;;  %v1793_v11 = vshll.u32 %v2849_v19, 16  ;;  %v2192_v61 = vld [vmem:[%s3690_s15 + $0x2c] sm:$0x1] }
 0xa71   :  { %2208 = vrot.lane.b32.xlu1 %v2207_v63, %s2916_s24  ;;  %1258 = vrot.lane.b32.xlu0 %v1257_v5, %s2938_s23  ;;  %v1704_v41 = vrot.slane %v1702_v3, 3  ;;  %v1707_v42 = vrot.slane %v1705_v44, 4  ;;  %v1802_v52 = vsel %vm1801_vm9, 4294967295, %v2929_v20  ;;  %v1880_v45 = vrot.slane %v2850_v47, 3 }
 0xa72   :  { %v1792_v15 = vrot.slane %v1790_v10, 3  ;;  %v1795_v22 = vrot.slane %v1793_v11, 4  ;;  %v1803_v58 = vsel %vm152_vm3, %v1802_v52, 0  ;;  %vm1797_vm11 = vcmask 56320  }
 0xa73   :  { %v1708_v4 = vor.u32 %v1707_v42, %v1704_v41  ;;  %v1886_v49 = vsel %vm1801_vm9, %v1880_v45, 0  ;;  %v1961_v59 = vrot.slane %v2851_v51, 2  ;;  %vm1881_vm13 = vcmask 48128   ;;  %v2854_v27 = vld [vmem:[%s3690_s15 + $0x2c] ss:$0 sps:$4 sm:$0x22]  }
 0xa74   :  { %v1796_v32 = vor.u32 %v1795_v22, %v1792_v15  ;;  %v2045_v62 = vshll.u32 %v2852_v18, 16  ;;  %v2043_v54 = vshrl.u32 %v2852_v18, 16  ;;  %vm1962_vm14 = vcmask 39936   ;;  %v2534_v22 = vld [vmem:[#allocation7] ss:$0 sm:$0xff] }
 0xa75   :  { %2282 = vrot.lane.b32.xlu1 %v2281_v24, %s2939_s26  ;;  %v1714_v14 = vsel %vm152_vm3, %v1708_v4, 0  ;;  %vm1966_vm3 = vcmask 1041408   ;;  %v2126_v63 = vshrl.u32 %v2853_v6, 16  ;;  %v2129_v5 = vshll.u32 %v2853_v6, 16  ;;  %v2533_v4 = vld [vmem:[%s3694_s19] ss:$0 sm:$0xff] }
 0xa76   :  { %v1805_v43 = vand.u32 %v1803_v58, %v1796_v32  ;;  %v1967_v0 = vsel %vm1966_vm3, 4294967295, %v2929_v20  ;;  %v2047_v46 = vrot.slane %v2045_v62, 1  ;;  %vm2137_vm15 = vcmask 1040384  }
 0xa77   :  { %v1968_v17 = vsel %vm1801_vm9, %v1967_v0, 0  ;;  %v2128_v26 = vrot.slane %v2126_v63, 2  ;;  %v2131_v24 = vrot.slane %v2129_v5, 3  ;;  %v2138_v30 = vsel %vm2137_vm15, 4294967295, %v2929_v20 }
 0xa78   :  { %v1970_v9 = vand.u32 %v1968_v17, %v1961_v59  ;;  %v2048_v56 = vor.u32 %v2047_v46, %v2043_v54  ;;  %v2139_v31 = vsel %vm1966_vm3, %v2138_v30, 0  ;;  %v2215_v20 = vsel %vm2137_vm15, %v2192_v61, 0  ;;  %v2435_v17 = vld [vmem:[%s3715_s10] sm:$0xf] }
 0xa79   :  { %v2132_v13 = vor.u32 %v2131_v24, %v2128_v26  ;;  %v2444_v54 = vsub.f32 1.0, %v2435_v17 }
 0xa7a   :  { %v2053_v25 = vsel %vm1966_vm3, %v2048_v56, 0 }
 0xa7b   :  { %v2141_v12 = vand.u32 %v2139_v31, %v2132_v13 }
 0xacf   :  { %v1441_v29 = vpop.permute.xlu0 %1440  ;;  %v1344_v8 = vpop.permute.xlu1 %1343 }
 0xad0   :  { %2663 = vmatmul.mubr.msk.bf16.vlgmr.msra.gmra.mrb[0].mxu0 %vm1367_vm2, %v1344_v8  ;;  %vm2133_vm2 = vcmask 23552  }
 0xad1   :  { %2667 = vmatpush3.bf16.msra.mxu0 %v1462_v28  ;;  %2668 = vmatprep.mubr.msk.bf16.mxu0 %vm2910_vm0, %v2909_v2  ;;  %v2287_v28 = vrot.slane %v2854_v27, 1 }
 0xad2   :  { %2672 = vmatprep.subr.bf16.mxu0 %v2909_v2 }
 0xad3   :  { %v1612_v1 = vpop.permute.xlu0 %1611  ;;  %v1531_v50 = vpop.permute.xlu1 %1530 }
 0xad7   :  { %v1783_v34 = vpop.permute.xlu0 %1782  ;;  %v1695_v36 = vpop.permute.xlu1 %1694 }
 0xadb   :  { %v3554_v16 = vpop.permute.xlu0 %1954  ;;  %v1874_v48 = vpop.permute.xlu1 %1873 }
 0xadc   :  { %2669 = vmatmul.mubr.msk.bf16.vlgmr.msra.gmra.mrb[0].mxu0 %vm1454_vm5, %v1441_v29  ;;  %v2293_v29 = vsel %vm2137_vm15, 65535, %v2912_v7  ;;  %vm2288_vm5 = vcmask 7168   ;;  %v2856_v7 = vld [vmem:[%s3692_s17 + $0x8] sm:$0xff]  }
 0xadd   :  { %2673 = vmatpush3.bf16.msra.mxu0 %v1543_v35  ;;  %2674 = vmatprep.mubr.msk.bf16.mxu0 %vm2910_vm0, %v2909_v2  ;;  %v2295_v8 = vand.u32 %v2293_v29, %v2287_v28 }
 0xade   :  { %2678 = vmatprep.subr.bf16.mxu0 %v2909_v2 }
 0xadf   :  { %v3562_v37 = vpop.permute.xlu0 %2120  ;;  %v2038_v53 = vpop.permute.xlu1 %2037 }
 0xae3   :  { %v1259_v38 = vpop.permute.xlu0 %1258  ;;  %v2209_v21 = vpop.permute.xlu1 %2208 }
 0xae4   :  { %2657 = vmatmul.mubr.msk.bf16.vlgmr.msra.gmra.mrb[32].mxu1 %vm1265_vm6, %v1259_v38 }
 0xae5   :  { %2736 = vmatprep.mubr.msk.bf16.mxu1 %vm2910_vm0, %v2909_v2  ;;  %2733 = vmatpush3.bf16.msra.mxu1 %v2855_v33 }
 0xae6   :  { %2734 = vmatprep.subr.bf16.mxu1 %v2909_v2 }
 0xae8   :  { %2675 = vmatmul.mubr.msk.bf16.vlgmr.msra.gmra.mrb[0].mxu0 %vm1538_vm7, %v1531_v50 }
 0xae9   :  { %2679 = vmatpush3.bf16.msra.mxu0 %v1626_v60  ;;  %2680 = vmatprep.mubr.msk.bf16.mxu0 %vm2910_vm0, %v2909_v2 }
 0xaea   :  { %2684 = vmatprep.subr.bf16.mxu0 %v2909_v2  ;;  %2735 = vmatpush3.bf16.msra.mxu1 %v2856_v7 }
 0xaf4   :  { %2681 = vmatmul.mubr.msk.bf16.vlgmr.msra.gmra.mrb[0].mxu0 %vm1619_vm8, %v1612_v1  ;;  %v2283_v1 = vpop.permute.xlu1 %2282 }
 0xaf5   :  { %2685 = vmatpush3.bf16.msra.mxu0 %v1714_v14  ;;  %2686 = vmatprep.mubr.msk.bf16.mxu0 %vm2910_vm0, %v2909_v2 }
 0xaf6   :  { %2690 = vmatprep.subr.bf16.mxu0 %v2909_v2 }
 0xb00   :  { %2687 = vmatmul.mubr.msk.bf16.vlgmr.msra.gmra.mrb[0].mxu0 %vm1709_vm10, %v1695_v36 }
 0xb01   :  { %2691 = vmatpush3.bf16.msra.mxu0 %v1805_v43  ;;  %2692 = vmatprep.mubr.msk.bf16.mxu0 %vm2910_vm0, %v2909_v2 }
 0xb02   :  { %2696 = vmatprep.subr.bf16.mxu0 %v2909_v2 }
 0xb0c   :  { %2693 = vmatmul.mubr.msk.bf16.vlgmr.msra.gmra.mrb[0].mxu0 %vm1797_vm11, %v1783_v34 }
 0xb0d   :  { %2697 = vmatpush3.bf16.msra.mxu0 %v1886_v49  ;;  %2698 = vmatprep.mubr.msk.bf16.mxu0 %vm2910_vm0, %v2909_v2 }
 0xb0e   :  { %2702 = vmatprep.subr.bf16.mxu0 %v2909_v2 }
 0xb18   :  { %2699 = vmatmul.mubr.msk.bf16.vlgmr.msra.gmra.mrb[0].mxu0 %vm1881_vm13, %v1874_v48 }
 0xb19   :  { %2703 = vmatpush3.bf16.msra.mxu0 %v1970_v9  ;;  %2704 = vmatprep.mubr.msk.bf16.mxu0 %vm2910_vm0, %v2909_v2 }
 0xb1a   :  { %2708 = vmatprep.subr.bf16.mxu0 %v2909_v2 }
 0xb24   :  { %2705 = vmatmul.mubr.msk.bf16.vlgmr.msra.gmra.mrb[0].mxu0 %vm1962_vm14, %v3554_v16 }
 0xb25   :  { %2709 = vmatpush3.bf16.msra.mxu0 %v2053_v25  ;;  %2710 = vmatprep.mubr.msk.bf16.mxu0 %vm2910_vm0, %v2909_v2 }
 0xb26   :  { %2714 = vmatprep.subr.bf16.mxu0 %v2909_v2 }
 0xb30   :  { %2711 = vmatmul.mubr.msk.bf16.vlgmr.msra.gmra.mrb[0].mxu0 %vm961_vm4, %v2038_v53  ;;  %vm2210_vm4 = vcmask 15360  }
 0xb31   :  { %2715 = vmatpush3.bf16.msra.mxu0 %v2141_v12  ;;  %2716 = vmatprep.mubr.msk.bf16.mxu0 %vm2910_vm0, %v2909_v2 }
 0xb32   :  { %2720 = vmatprep.subr.bf16.mxu0 %v2909_v2 }
 0xb3c   :  { %2717 = vmatmul.mubr.msk.bf16.vlgmr.msra.gmra.mrb[0].mxu0 %vm2133_vm2, %v3562_v37  ;;  %v2497_v37 = vld [vmem:[%s3691_s16] ss:$0 sm:$0xff] }
 0xb3d   :  { %2721 = vmatpush3.bf16.msra.mxu0 %v2215_v20  ;;  %2722 = vmatprep.mubr.msk.bf16.mxu0 %vm2910_vm0, %v2909_v2 }
 0xb3e   :  { %2726 = vmatprep.subr.bf16.mxu0 %v2909_v2 }
 0xb48   :  { %2723 = vmatmul.mubr.msk.bf16.vlgmr.msra.gmra.mrb[0].mxu0 %vm2210_vm4, %v2209_v21 }
 0xb49   :  { %2727 = vmatpush3.bf16.msra.mxu0 %v2295_v8  ;;  %2728 = vmatprep.mubr.msk.bf16.mxu0 %vm2910_vm0, %v2909_v2  ;;  %v2529_v2 = vld [vmem:[%s3693_s18] ss:$0 sm:$0xff]  ;;  %vm2433_vm0 = vcmask 3072  }
 0xb54   :  { %2729 = vmatmul.mubr.msk.bf16.vlgmr.msra.gmra.mrb[0].mxu0 %vm2288_vm5, %v2283_v1 }
 0xbb7   :  { %v1310_v34 = vpop.f32.mrb[32].mxu1 }
 0xbb8   :  { %v2658_v35 = vpop.f32.mrb[33].mxu1  ;;  %v2740_v57 = vadd.f32 %v2497_v37, %v1310_v34 }
 0xbb9   :  { %v1313_v16 = vpop.f32.mrb[34].mxu1 }
 0xbba   :  { %v2659_v23 = vpop.f32.mrb[35].mxu1 }
 0xc27   :  { %v2331_v39 = vpop.f32.mrb[0].mxu0 }
 0xc28   :  { %v2741_v40 = vadd.f32 %v2740_v57, %v2331_v39  ;;  %v2730_v55 = vpop.f32.mrb[1].mxu0 }
 0xc29   :  { %v2334_v38 = vpop.f32.mrb[2].mxu0 }
 0xc2a   :  { %v2338_v60 = vmax.f32 %v2741_v40, 0.0  ;;  %v2731_v3 = vpop.f32.mrb[3].mxu0 }
 0xc2c   :  { %v2339_v44 = vpack.c.bf16 %v2338_v60, %v2338_v60 }
 0xc2e   :  { %2737 = vmatmul.mubr.msk.bf16.vlgmr.msra.gmra.mrb[36].mxu1 %vm94_vm1, %v2339_v44  ;;  %vm2456_vm1 = vcmask 0  }
 0xd01   :  { %v2400_v50 = vpop.f32.mrb[36].mxu1 }
 0xd02   :  { %v2401_v41 = vadd.f32 %v2529_v2, %v2400_v50  ;;  %v2738_v42 = vpop.f32.mrb[37].mxu1 }
 0xd03   :  { %v2403_v19 = vpop.f32.mrb[38].mxu1 }
 0xd04   :  { %v2406_v10 = vmax.f32 %v2401_v41, 0.0  ;;  %v2739_v11 = vpop.f32.mrb[39].mxu1 }
 0xd06   :  { %v2414_v14 = vmul.f32 %v2533_v4, %v2406_v10 }
 0xd08   :  { %v2415_v15 = vsel %vm468_vm12, %v2414_v14, 0.0 }
 0xd09   :  { %2416 = vadd.xlane.f32.xlu0 %v2415_v15 }
 0xd96   :  { %v2417_v52 = vpop.xlane.xlu0 %2416 }
 0xd97   :  { %v2425_v32 = vadd.f32 %v2534_v22, %v2417_v52 }
 0xd99   :  { %v2426_v58 = vsub.f32 0.0, %v2425_v32 }
 0xd9b   :  { %v2427_v43 = vmul.f32 1.442695, %v2426_v58 }
 0xd9d   :  { %2877 = vpow2.f32 %v2427_v43 }
 0xda7   :  { %v2878_v36 = vpop.eup %2877 }
 0xda8   :  { %v2429_v47 = vadd.f32 1.0, %v2878_v36 }
 0xdaa   :  { %2879 = vrcp.f32 %v2429_v47 }
 0xdb4   :  { %v2880_v45 = vpop.eup %2879 }
 0xdb5   :  { %v2431_v49 = vmax.f32 %v2880_v45, 0.0 }
 0xdb7   :  { %v2432_v51 = vmin.f32 %v2431_v49, 1.0 }
 0xdb9   :  { %2881 = vlog2.f32 %v2432_v51  ;;  %v2439_v0 = vsub.f32 1.0, %v2432_v51  ;;  %2434 = vst.msk [vmem:[%s3697_s22] sm:$0xf] %vm2433_vm0, %v2432_v51  ;;  %s2940_s22 = smov [#allocation8]  }
 0xdba   :  { %s2464_s11 = sshll.u32 %s2940_s22, 4  ;;  %s2465_s11 = int_to_ptr.vmem [resolvable:$true] %s2464_s11 }
 0xdbb   :  { %2883 = vlog2.f32 %v2439_v0  ;;  %s2885_s6 = scalar_lea.vmem %s2465_s11, 16  ;;  %s2889_s14 = scalar_lea.vmem %s2465_s11, 32 }
 0xdbc   :  { %p2886_p0 = scmp.ne.s32.totalorder %s2465_s11, %s2885_s6  ;;  %p2890_p1 = scmp.lt.s32.totalorder %s2465_s11, %s2465_s11 }
 0xdbd   :  { %p2891_p2 = scmp.lt.s32.totalorder %s2889_s14, %s2885_s6 }
 0xdbf   :  { %p2892_p3 = por %p2891_p2, %p2890_p1 }
 0xdc1   :  { %p2893_p4 = pnand %p2892_p3, %p2886_p0 }
 0xdc3   :  { %v2882_v59 = vpop.eup %2881 }
 0xdc4   :  { %v2437_v18 = vmul.f32 0.6931472, %v2882_v59 }
 0xdc5   :  { %v2884_v9 = vpop.eup %2883 }
 0xdc6   :  { %v2438_v62 = vmax.f32 %v2437_v18, -100.0  ;;  %v2441_v48 = vmul.f32 0.6931472, %v2884_v9 }
 0xdc8   :  { %v2442_v46 = vmax.f32 %v2441_v48, -100.0  ;;  %v2443_v6 = vmul.f32 %v2438_v62, %v2435_v17 }
 0xdca   :  { %v2445_v56 = vmul.f32 %v2444_v54, %v2442_v46 }
 0xdcc   :  { %v2446_v63 = vadd.f32 %v2445_v56, %v2443_v6 }
 0xdce   :  { %v2447_v5 = vsub.f32 0.0, %v2446_v63 }
 0xdd0   :  { %v2448_v25 = vsel %vm2433_vm0, %v2447_v5, 0.0 }
 0xdd1   :  { %v2449_v26 = vrot.slane %v2448_v25, 4 }
 0xdd3   :  { %v2450_v24 = vadd.f32 %v2449_v26, %v2448_v25 }
 0xdd5   :  { %v2451_v30 = vrot.slane %v2450_v24, 2 }
 0xdd7   :  { %v2452_v13 = vadd.f32 %v2451_v30, %v2450_v24 }
 0xdd9   :  { %v2453_v31 = vrot.slane %v2452_v13, 1 }
 0xddb   :  { %v2454_v12 = vadd.f32 %v2453_v31, %v2452_v13 }
 0xddd   :  { %v2455_v53 = vmul.f32 0.25, %v2454_v12 }
 0xddf   :  { %2457 = vst.msk [vmem:[#allocation8] sm:$0x1] %vm2456_vm1, %v2455_v53 }
 0xde0   :  { %2896 = shalt.err (!%p2893_p4)
}
 0xde1   :  { %s2897_s12 = scalar_lea.hbm %s3696_s21, 16 }
 0xde2   :  { %p2898_p5 = scmp.ne.s32.totalorder %s3696_s21, %s2897_s12  ;;  %p2901_p6 = scmp.lt.u32.totalorder %s2897_s12, %s3696_s21 }
 0xde4   :  { %p2903_p7 = pnand %p2901_p6, %p2898_p5 }
 0xde6   :  { %2906 = shalt.err (!%p2903_p7)
}
 0xde7   :  { %2467 = dma.vmem_to_hbm [thread:$0]  %s2465_s11, 16, %s3696_s21, [#allocation9]  }
 0xde8   :  { %2907 = dma.done.wait [#allocation9], 16  }
 0xde9   :  { %2908 = vsyncadd [#allocation9], 4294967280 }
 0xdea   :  { %2475 = vsyncpa [#allocation9], 1 }

</bundles_post_ra>
